<compile_context>
chip_gen: v5e
topology: v5e:2x2
jax: 0.10.0
libtpu: 0.0.40
codegen_flags: <defaults>
</compile_context>

<pallas_src>
import jax
import jax.numpy as jnp
from jax.experimental import pallas as pl
from jax.experimental.pallas import tpu as pltpu


# ---------------- fused Pallas kernel ----------------

def _downsample_kernel(w_ref, scale_ref, shift_ref, alpha_ref,
                       xee_ref, xeo_ref, xoe_ref, xoo_ref, o_ref):
    """Fused reflect-pad conv3x3 stride-2 + folded BN + PReLU for one batch.

    w_ref     : SMEM (C_out*C_in*9,) f32   flattened OIHW conv weight
    scale_ref : SMEM (C_out,) f32          folded BN scale  (gamma / sqrt(var+eps))
    shift_ref : SMEM (C_out,) f32          folded BN shift  (beta - mean*scale)
    alpha_ref : SMEM (1,) f32              PReLU slope
    x??_ref   : VMEM (1, C_in, *, *)       even/odd phase planes of the padded input
    o_ref     : VMEM (1, C_out, H_out, W_out)
    """
    C_in = xee_ref.shape[1]
    C_out = o_ref.shape[1]
    H_out = o_ref.shape[2]
    W_out = o_ref.shape[3]
    phase = {(0, 0): xee_ref, (0, 1): xeo_ref,
             (1, 0): xoe_ref, (1, 1): xoo_ref}

    # Load the 9 stride-2 conv taps for every input channel once.
    # Thanks to the phase decomposition these are plain unit-stride static
    # slices:  tap(di, dj)[i, j] == xpad[2*i + di, 2*j + dj].
    taps = []
    for ci in range(C_in):
        per_ci = []
        for di in range(3):
            ai = di // 2
            for dj in range(3):
                aj = dj // 2
                ref = phase[(di % 2, dj % 2)]
                v = ref[0, ci, ai:ai + H_out, aj:aj + W_out].astype(jnp.float32)
                per_ci.append(v)
        taps.append(per_ci)

    alpha = alpha_ref[0]
    for co in range(C_out):
        acc = jnp.zeros((H_out, W_out), jnp.float32)
        for ci in range(C_in):
            base = (co * C_in + ci) * 9
            for t in range(9):
                # scalar (SMEM) weight broadcast-FMA on the VPU
                acc = acc + w_ref[base + t] * taps[ci][t]
        # folded inference BatchNorm, then PReLU
        y = acc * scale_ref[co] + shift_ref[co]
        y = jnp.where(y >= 0, y, alpha * y)
        o_ref[0, co, :, :] = y.astype(o_ref.dtype)


# ---------------- wrapper ----------------

def downsample_forward(x, weight, gamma, beta, running_mean, running_var,
                       alpha, eps=1e-5):
    """DownSample.forward: reflect-pad conv3x3/stride2 -> BatchNorm2d -> PReLU."""
    B, C, H, W = x.shape
    C_out = weight.shape[0]
    H_out = (H + 2 - 3) // 2 + 1
    W_out = (W + 2 - 3) // 2 + 1

    # Reflect pad (padding=1) + even/odd phase split: cheap XLA glue that turns
    # every stride-2 conv tap into a unit-stride in-kernel load.
    # TODO(synk): reflect indexing / stride-2 phase split kept in the wrapper
    #             (no clean in-kernel equivalent without lane-strided loads).
    xp = jnp.pad(x, ((0, 0), (0, 0), (1, 1), (1, 1)), mode='reflect')
    x_ee = xp[:, :, 0::2, 0::2][:, :, :H_out + 1, :W_out + 1]
    x_eo = xp[:, :, 0::2, 1::2][:, :, :H_out + 1, :W_out]
    x_oe = xp[:, :, 1::2, 0::2][:, :, :H_out, :W_out + 1]
    x_oo = xp[:, :, 1::2, 1::2][:, :, :H_out, :W_out]

    # Fold BatchNorm (inference mode) into per-channel scale/shift.
    scale = (gamma / jnp.sqrt(running_var + eps)).astype(jnp.float32)
    shift = (beta - running_mean * scale).astype(jnp.float32)

    w_flat = weight.reshape(-1).astype(jnp.float32)          # (C_out*C_in*9,)
    alpha_arr = jnp.full((1,), alpha, jnp.float32)

    smem_spec = pl.BlockSpec(memory_space=pltpu.MemorySpace.SMEM)

    def phase_spec(a):
        s = a.shape
        return pl.BlockSpec((1, s[1], s[2], s[3]), lambda b: (b, 0, 0, 0))

    return pl.pallas_call(
        _downsample_kernel,
        out_shape=jax.ShapeDtypeStruct((B, C_out, H_out, W_out), x.dtype),
        grid=(B,),
        in_specs=[smem_spec, smem_spec, smem_spec, smem_spec,
                  phase_spec(x_ee), phase_spec(x_eo),
                  phase_spec(x_oe), phase_spec(x_oo)],
        out_specs=pl.BlockSpec((1, C_out, H_out, W_out),
                               lambda b: (b, 0, 0, 0)),
        compiler_params=pltpu.CompilerParams(
            dimension_semantics=("parallel",),
            vmem_limit_bytes=32 * 1024 * 1024),
    )(w_flat, scale, shift, alpha_arr, x_ee, x_eo, x_oe, x_oo)


# ---------------- pure-JAX reference ----------------

def downsample_reference(x, weight, gamma, beta, running_mean, running_var,
                         alpha, eps=1e-5):
    xp = jnp.pad(x, ((0, 0), (0, 0), (1, 1), (1, 1)), mode='reflect')
    y = jax.lax.conv_general_dilated(
        xp, weight, window_strides=(2, 2), padding='VALID',
        dimension_numbers=('NCHW', 'OIHW', 'NCHW'))
    scale = gamma / jnp.sqrt(running_var + eps)
    shift = beta - running_mean * scale
    y = y * scale[None, :, None, None] + shift[None, :, None, None]
    return jnp.where(y >= 0, y, alpha * y)


if __name__ == "__main__":
    key = jax.random.PRNGKey(0)
    kx, kw, kg, kb, km, kv = jax.random.split(key, 6)

    B, C, H, W = 2, 4, 16, 16
    x = jax.random.normal(kx, (B, C, H, W), dtype=jnp.float32)
    weight = jax.random.normal(kw, (C, C, 3, 3), dtype=jnp.float32) * 0.1
    gamma = 1.0 + 0.1 * jax.random.normal(kg, (C,), dtype=jnp.float32)
    beta = 0.1 * jax.random.normal(kb, (C,), dtype=jnp.float32)
    running_mean = 0.1 * jax.random.normal(km, (C,), dtype=jnp.float32)
    running_var = jax.random.uniform(kv, (C,), dtype=jnp.float32,
                                     minval=0.5, maxval=1.5)
    alpha = 0.25  # nn.PReLU() default single shared parameter

    out = downsample_forward(x, weight, gamma, beta, running_mean,
                             running_var, alpha)
    out = jax.block_until_ready(out)

    ref = downsample_reference(x, weight, gamma, beta, running_mean,
                               running_var, alpha)
    assert out.shape == (B, C, H // 2, W // 2), out.shape
    assert jnp.allclose(out, ref, atol=1e-4, rtol=1e-4), \
        float(jnp.max(jnp.abs(out - ref)))
    print("KERNEL_OK")
</pallas_src>

<mosaic_0001>
module attributes {stable_mosaic.version = 11 : i64} {
  func.func @_downsample_kernel(%arg0: i32, %arg1: memref<144xf32, #tpu.memory_space<smem>>, %arg2: memref<4xf32, #tpu.memory_space<smem>>, %arg3: memref<4xf32, #tpu.memory_space<smem>>, %arg4: memref<1xf32, #tpu.memory_space<smem>>, %arg5: memref<1x4x9x9xf32, #tpu.memory_space<vmem>>, %arg6: memref<1x4x9x8xf32, #tpu.memory_space<vmem>>, %arg7: memref<1x4x8x9xf32, #tpu.memory_space<vmem>>, %arg8: memref<1x4x8x8xf32, #tpu.memory_space<vmem>>, %arg9: memref<1x4x8x8xf32, #tpu.memory_space<vmem>>) attributes {dimension_semantics = [#tpu.dimension_semantics<parallel>], iteration_bounds = array<i64: 2>, scalar_prefetch = 0 : i64, scratch_operands = 0 : i64, tpu.core_type = #tpu.core_type<tc>, window_params = [{transform_indices = @transform_0, window_bounds = array<i64: 144>}, {transform_indices = @transform_1, window_bounds = array<i64: 4>}, {transform_indices = @transform_2, window_bounds = array<i64: 4>}, {transform_indices = @transform_3, window_bounds = array<i64: 1>}, {transform_indices = @transform_4, window_bounds = array<i64: 1, 4, 9, 9>}, {transform_indices = @transform_5, window_bounds = array<i64: 1, 4, 9, 8>}, {transform_indices = @transform_6, window_bounds = array<i64: 1, 4, 8, 9>}, {transform_indices = @transform_7, window_bounds = array<i64: 1, 4, 8, 8>}, {transform_indices = @transform_8, window_bounds = array<i64: 1, 4, 8, 8>}]} {
    %c0 = arith.constant 0 : index
    %c0_0 = arith.constant 0 : index
    %c0_1 = arith.constant 0 : index
    %c0_2 = arith.constant 0 : index
    %0 = vector.load %arg5[%c0, %c0_0, %c0_1, %c0_2] : memref<1x4x9x9xf32, #tpu.memory_space<vmem>>, vector<1x1x8x8xf32>
    %1 = vector.shape_cast %0 : vector<1x1x8x8xf32> to vector<8x8xf32>
    %c0_3 = arith.constant 0 : index
    %c0_4 = arith.constant 0 : index
    %c0_5 = arith.constant 0 : index
    %c0_6 = arith.constant 0 : index
    %2 = vector.load %arg6[%c0_3, %c0_4, %c0_5, %c0_6] : memref<1x4x9x8xf32, #tpu.memory_space<vmem>>, vector<1x1x8x8xf32>
    %3 = vector.shape_cast %2 : vector<1x1x8x8xf32> to vector<8x8xf32>
    %c0_7 = arith.constant 0 : index
    %c0_8 = arith.constant 0 : index
    %c0_9 = arith.constant 0 : index
    %c1 = arith.constant 1 : index
    %4 = vector.load %arg5[%c0_7, %c0_8, %c0_9, %c1] : memref<1x4x9x9xf32, #tpu.memory_space<vmem>>, vector<1x1x8x8xf32>
    %5 = vector.shape_cast %4 : vector<1x1x8x8xf32> to vector<8x8xf32>
    %c0_10 = arith.constant 0 : index
    %c0_11 = arith.constant 0 : index
    %c0_12 = arith.constant 0 : index
    %c0_13 = arith.constant 0 : index
    %6 = vector.load %arg7[%c0_10, %c0_11, %c0_12, %c0_13] : memref<1x4x8x9xf32, #tpu.memory_space<vmem>>, vector<1x1x8x8xf32>
    %7 = vector.shape_cast %6 : vector<1x1x8x8xf32> to vector<8x8xf32>
    %c0_14 = arith.constant 0 : index
    %c0_15 = arith.constant 0 : index
    %c0_16 = arith.constant 0 : index
    %c0_17 = arith.constant 0 : index
    %8 = vector.load %arg8[%c0_14, %c0_15, %c0_16, %c0_17] : memref<1x4x8x8xf32, #tpu.memory_space<vmem>>, vector<1x1x8x8xf32>
    %9 = vector.shape_cast %8 : vector<1x1x8x8xf32> to vector<8x8xf32>
    %c0_18 = arith.constant 0 : index
    %c0_19 = arith.constant 0 : index
    %c0_20 = arith.constant 0 : index
    %c1_21 = arith.constant 1 : index
    %10 = vector.load %arg7[%c0_18, %c0_19, %c0_20, %c1_21] : memref<1x4x8x9xf32, #tpu.memory_space<vmem>>, vector<1x1x8x8xf32>
    %11 = vector.shape_cast %10 : vector<1x1x8x8xf32> to vector<8x8xf32>
    %c0_22 = arith.constant 0 : index
    %c0_23 = arith.constant 0 : index
    %c1_24 = arith.constant 1 : index
    %c0_25 = arith.constant 0 : index
    %12 = vector.load %arg5[%c0_22, %c0_23, %c1_24, %c0_25] : memref<1x4x9x9xf32, #tpu.memory_space<vmem>>, vector<1x1x8x8xf32>
    %13 = vector.shape_cast %12 : vector<1x1x8x8xf32> to vector<8x8xf32>
    %c0_26 = arith.constant 0 : index
    %c0_27 = arith.constant 0 : index
    %c1_28 = arith.constant 1 : index
    %c0_29 = arith.constant 0 : index
    %14 = vector.load %arg6[%c0_26, %c0_27, %c1_28, %c0_29] : memref<1x4x9x8xf32, #tpu.memory_space<vmem>>, vector<1x1x8x8xf32>
    %15 = vector.shape_cast %14 : vector<1x1x8x8xf32> to vector<8x8xf32>
    %c0_30 = arith.constant 0 : index
    %c0_31 = arith.constant 0 : index
    %c1_32 = arith.constant 1 : index
    %c1_33 = arith.constant 1 : index
    %16 = vector.load %arg5[%c0_30, %c0_31, %c1_32, %c1_33] : memref<1x4x9x9xf32, #tpu.memory_space<vmem>>, vector<1x1x8x8xf32>
    %17 = vector.shape_cast %16 : vector<1x1x8x8xf32> to vector<8x8xf32>
    %c0_34 = arith.constant 0 : index
    %c1_35 = arith.constant 1 : index
    %c0_36 = arith.constant 0 : index
    %c0_37 = arith.constant 0 : index
    %18 = vector.load %arg5[%c0_34, %c1_35, %c0_36, %c0_37] : memref<1x4x9x9xf32, #tpu.memory_space<vmem>>, vector<1x1x8x8xf32>
    %19 = vector.shape_cast %18 : vector<1x1x8x8xf32> to vector<8x8xf32>
    %c0_38 = arith.constant 0 : index
    %c1_39 = arith.constant 1 : index
    %c0_40 = arith.constant 0 : index
    %c0_41 = arith.constant 0 : index
    %20 = vector.load %arg6[%c0_38, %c1_39, %c0_40, %c0_41] : memref<1x4x9x8xf32, #tpu.memory_space<vmem>>, vector<1x1x8x8xf32>
    %21 = vector.shape_cast %20 : vector<1x1x8x8xf32> to vector<8x8xf32>
    %c0_42 = arith.constant 0 : index
    %c1_43 = arith.constant 1 : index
    %c0_44 = arith.constant 0 : index
    %c1_45 = arith.constant 1 : index
    %22 = vector.load %arg5[%c0_42, %c1_43, %c0_44, %c1_45] : memref<1x4x9x9xf32, #tpu.memory_space<vmem>>, vector<1x1x8x8xf32>
    %23 = vector.shape_cast %22 : vector<1x1x8x8xf32> to vector<8x8xf32>
    %c0_46 = arith.constant 0 : index
    %c1_47 = arith.constant 1 : index
    %c0_48 = arith.constant 0 : index
    %c0_49 = arith.constant 0 : index
    %24 = vector.load %arg7[%c0_46, %c1_47, %c0_48, %c0_49] : memref<1x4x8x9xf32, #tpu.memory_space<vmem>>, vector<1x1x8x8xf32>
    %25 = vector.shape_cast %24 : vector<1x1x8x8xf32> to vector<8x8xf32>
    %c0_50 = arith.constant 0 : index
    %c1_51 = arith.constant 1 : index
    %c0_52 = arith.constant 0 : index
    %c0_53 = arith.constant 0 : index
    %26 = vector.load %arg8[%c0_50, %c1_51, %c0_52, %c0_53] : memref<1x4x8x8xf32, #tpu.memory_space<vmem>>, vector<1x1x8x8xf32>
    %27 = vector.shape_cast %26 : vector<1x1x8x8xf32> to vector<8x8xf32>
    %c0_54 = arith.constant 0 : index
    %c1_55 = arith.constant 1 : index
    %c0_56 = arith.constant 0 : index
    %c1_57 = arith.constant 1 : index
    %28 = vector.load %arg7[%c0_54, %c1_55, %c0_56, %c1_57] : memref<1x4x8x9xf32, #tpu.memory_space<vmem>>, vector<1x1x8x8xf32>
    %29 = vector.shape_cast %28 : vector<1x1x8x8xf32> to vector<8x8xf32>
    %c0_58 = arith.constant 0 : index
    %c1_59 = arith.constant 1 : index
    %c1_60 = arith.constant 1 : index
    %c0_61 = arith.constant 0 : index
    %30 = vector.load %arg5[%c0_58, %c1_59, %c1_60, %c0_61] : memref<1x4x9x9xf32, #tpu.memory_space<vmem>>, vector<1x1x8x8xf32>
    %31 = vector.shape_cast %30 : vector<1x1x8x8xf32> to vector<8x8xf32>
    %c0_62 = arith.constant 0 : index
    %c1_63 = arith.constant 1 : index
    %c1_64 = arith.constant 1 : index
    %c0_65 = arith.constant 0 : index
    %32 = vector.load %arg6[%c0_62, %c1_63, %c1_64, %c0_65] : memref<1x4x9x8xf32, #tpu.memory_space<vmem>>, vector<1x1x8x8xf32>
    %33 = vector.shape_cast %32 : vector<1x1x8x8xf32> to vector<8x8xf32>
    %c0_66 = arith.constant 0 : index
    %c1_67 = arith.constant 1 : index
    %c1_68 = arith.constant 1 : index
    %c1_69 = arith.constant 1 : index
    %34 = vector.load %arg5[%c0_66, %c1_67, %c1_68, %c1_69] : memref<1x4x9x9xf32, #tpu.memory_space<vmem>>, vector<1x1x8x8xf32>
    %35 = vector.shape_cast %34 : vector<1x1x8x8xf32> to vector<8x8xf32>
    %c0_70 = arith.constant 0 : index
    %c2 = arith.constant 2 : index
    %c0_71 = arith.constant 0 : index
    %c0_72 = arith.constant 0 : index
    %36 = vector.load %arg5[%c0_70, %c2, %c0_71, %c0_72] : memref<1x4x9x9xf32, #tpu.memory_space<vmem>>, vector<1x1x8x8xf32>
    %37 = vector.shape_cast %36 : vector<1x1x8x8xf32> to vector<8x8xf32>
    %c0_73 = arith.constant 0 : index
    %c2_74 = arith.constant 2 : index
    %c0_75 = arith.constant 0 : index
    %c0_76 = arith.constant 0 : index
    %38 = vector.load %arg6[%c0_73, %c2_74, %c0_75, %c0_76] : memref<1x4x9x8xf32, #tpu.memory_space<vmem>>, vector<1x1x8x8xf32>
    %39 = vector.shape_cast %38 : vector<1x1x8x8xf32> to vector<8x8xf32>
    %c0_77 = arith.constant 0 : index
    %c2_78 = arith.constant 2 : index
    %c0_79 = arith.constant 0 : index
    %c1_80 = arith.constant 1 : index
    %40 = vector.load %arg5[%c0_77, %c2_78, %c0_79, %c1_80] : memref<1x4x9x9xf32, #tpu.memory_space<vmem>>, vector<1x1x8x8xf32>
    %41 = vector.shape_cast %40 : vector<1x1x8x8xf32> to vector<8x8xf32>
    %c0_81 = arith.constant 0 : index
    %c2_82 = arith.constant 2 : index
    %c0_83 = arith.constant 0 : index
    %c0_84 = arith.constant 0 : index
    %42 = vector.load %arg7[%c0_81, %c2_82, %c0_83, %c0_84] : memref<1x4x8x9xf32, #tpu.memory_space<vmem>>, vector<1x1x8x8xf32>
    %43 = vector.shape_cast %42 : vector<1x1x8x8xf32> to vector<8x8xf32>
    %c0_85 = arith.constant 0 : index
    %c2_86 = arith.constant 2 : index
    %c0_87 = arith.constant 0 : index
    %c0_88 = arith.constant 0 : index
    %44 = vector.load %arg8[%c0_85, %c2_86, %c0_87, %c0_88] : memref<1x4x8x8xf32, #tpu.memory_space<vmem>>, vector<1x1x8x8xf32>
    %45 = vector.shape_cast %44 : vector<1x1x8x8xf32> to vector<8x8xf32>
    %c0_89 = arith.constant 0 : index
    %c2_90 = arith.constant 2 : index
    %c0_91 = arith.constant 0 : index
    %c1_92 = arith.constant 1 : index
    %46 = vector.load %arg7[%c0_89, %c2_90, %c0_91, %c1_92] : memref<1x4x8x9xf32, #tpu.memory_space<vmem>>, vector<1x1x8x8xf32>
    %47 = vector.shape_cast %46 : vector<1x1x8x8xf32> to vector<8x8xf32>
    %c0_93 = arith.constant 0 : index
    %c2_94 = arith.constant 2 : index
    %c1_95 = arith.constant 1 : index
    %c0_96 = arith.constant 0 : index
    %48 = vector.load %arg5[%c0_93, %c2_94, %c1_95, %c0_96] : memref<1x4x9x9xf32, #tpu.memory_space<vmem>>, vector<1x1x8x8xf32>
    %49 = vector.shape_cast %48 : vector<1x1x8x8xf32> to vector<8x8xf32>
    %c0_97 = arith.constant 0 : index
    %c2_98 = arith.constant 2 : index
    %c1_99 = arith.constant 1 : index
    %c0_100 = arith.constant 0 : index
    %50 = vector.load %arg6[%c0_97, %c2_98, %c1_99, %c0_100] : memref<1x4x9x8xf32, #tpu.memory_space<vmem>>, vector<1x1x8x8xf32>
    %51 = vector.shape_cast %50 : vector<1x1x8x8xf32> to vector<8x8xf32>
    %c0_101 = arith.constant 0 : index
    %c2_102 = arith.constant 2 : index
    %c1_103 = arith.constant 1 : index
    %c1_104 = arith.constant 1 : index
    %52 = vector.load %arg5[%c0_101, %c2_102, %c1_103, %c1_104] : memref<1x4x9x9xf32, #tpu.memory_space<vmem>>, vector<1x1x8x8xf32>
    %53 = vector.shape_cast %52 : vector<1x1x8x8xf32> to vector<8x8xf32>
    %c0_105 = arith.constant 0 : index
    %c3 = arith.constant 3 : index
    %c0_106 = arith.constant 0 : index
    %c0_107 = arith.constant 0 : index
    %54 = vector.load %arg5[%c0_105, %c3, %c0_106, %c0_107] : memref<1x4x9x9xf32, #tpu.memory_space<vmem>>, vector<1x1x8x8xf32>
    %55 = vector.shape_cast %54 : vector<1x1x8x8xf32> to vector<8x8xf32>
    %c0_108 = arith.constant 0 : index
    %c3_109 = arith.constant 3 : index
    %c0_110 = arith.constant 0 : index
    %c0_111 = arith.constant 0 : index
    %56 = vector.load %arg6[%c0_108, %c3_109, %c0_110, %c0_111] : memref<1x4x9x8xf32, #tpu.memory_space<vmem>>, vector<1x1x8x8xf32>
    %57 = vector.shape_cast %56 : vector<1x1x8x8xf32> to vector<8x8xf32>
    %c0_112 = arith.constant 0 : index
    %c3_113 = arith.constant 3 : index
    %c0_114 = arith.constant 0 : index
    %c1_115 = arith.constant 1 : index
    %58 = vector.load %arg5[%c0_112, %c3_113, %c0_114, %c1_115] : memref<1x4x9x9xf32, #tpu.memory_space<vmem>>, vector<1x1x8x8xf32>
    %59 = vector.shape_cast %58 : vector<1x1x8x8xf32> to vector<8x8xf32>
    %c0_116 = arith.constant 0 : index
    %c3_117 = arith.constant 3 : index
    %c0_118 = arith.constant 0 : index
    %c0_119 = arith.constant 0 : index
    %60 = vector.load %arg7[%c0_116, %c3_117, %c0_118, %c0_119] : memref<1x4x8x9xf32, #tpu.memory_space<vmem>>, vector<1x1x8x8xf32>
    %61 = vector.shape_cast %60 : vector<1x1x8x8xf32> to vector<8x8xf32>
    %c0_120 = arith.constant 0 : index
    %c3_121 = arith.constant 3 : index
    %c0_122 = arith.constant 0 : index
    %c0_123 = arith.constant 0 : index
    %62 = vector.load %arg8[%c0_120, %c3_121, %c0_122, %c0_123] : memref<1x4x8x8xf32, #tpu.memory_space<vmem>>, vector<1x1x8x8xf32>
    %63 = vector.shape_cast %62 : vector<1x1x8x8xf32> to vector<8x8xf32>
    %c0_124 = arith.constant 0 : index
    %c3_125 = arith.constant 3 : index
    %c0_126 = arith.constant 0 : index
    %c1_127 = arith.constant 1 : index
    %64 = vector.load %arg7[%c0_124, %c3_125, %c0_126, %c1_127] : memref<1x4x8x9xf32, #tpu.memory_space<vmem>>, vector<1x1x8x8xf32>
    %65 = vector.shape_cast %64 : vector<1x1x8x8xf32> to vector<8x8xf32>
    %c0_128 = arith.constant 0 : index
    %c3_129 = arith.constant 3 : index
    %c1_130 = arith.constant 1 : index
    %c0_131 = arith.constant 0 : index
    %66 = vector.load %arg5[%c0_128, %c3_129, %c1_130, %c0_131] : memref<1x4x9x9xf32, #tpu.memory_space<vmem>>, vector<1x1x8x8xf32>
    %67 = vector.shape_cast %66 : vector<1x1x8x8xf32> to vector<8x8xf32>
    %c0_132 = arith.constant 0 : index
    %c3_133 = arith.constant 3 : index
    %c1_134 = arith.constant 1 : index
    %c0_135 = arith.constant 0 : index
    %68 = vector.load %arg6[%c0_132, %c3_133, %c1_134, %c0_135] : memref<1x4x9x8xf32, #tpu.memory_space<vmem>>, vector<1x1x8x8xf32>
    %69 = vector.shape_cast %68 : vector<1x1x8x8xf32> to vector<8x8xf32>
    %c0_136 = arith.constant 0 : index
    %c3_137 = arith.constant 3 : index
    %c1_138 = arith.constant 1 : index
    %c1_139 = arith.constant 1 : index
    %70 = vector.load %arg5[%c0_136, %c3_137, %c1_138, %c1_139] : memref<1x4x9x9xf32, #tpu.memory_space<vmem>>, vector<1x1x8x8xf32>
    %71 = vector.shape_cast %70 : vector<1x1x8x8xf32> to vector<8x8xf32>
    %c0_140 = arith.constant 0 : index
    %72 = memref.load %arg4[%c0_140] : memref<1xf32, #tpu.memory_space<smem>>
    %cst = arith.constant 0.000000e+00 : f32
    %73 = vector.broadcast %cst : f32 to vector<8x8xf32>
    %c0_141 = arith.constant 0 : index
    %74 = memref.load %arg1[%c0_141] : memref<144xf32, #tpu.memory_space<smem>>
    %75 = vector.broadcast %74 : f32 to vector<8x8xf32>
    %76 = arith.mulf %75, %1 : vector<8x8xf32>
    %77 = arith.addf %73, %76 : vector<8x8xf32>
    %c1_142 = arith.constant 1 : index
    %78 = memref.load %arg1[%c1_142] : memref<144xf32, #tpu.memory_space<smem>>
    %79 = vector.broadcast %78 : f32 to vector<8x8xf32>
    %80 = arith.mulf %79, %3 : vector<8x8xf32>
    %81 = arith.addf %77, %80 : vector<8x8xf32>
    %c2_143 = arith.constant 2 : index
    %82 = memref.load %arg1[%c2_143] : memref<144xf32, #tpu.memory_space<smem>>
    %83 = vector.broadcast %82 : f32 to vector<8x8xf32>
    %84 = arith.mulf %83, %5 : vector<8x8xf32>
    %85 = arith.addf %81, %84 : vector<8x8xf32>
    %c3_144 = arith.constant 3 : index
    %86 = memref.load %arg1[%c3_144] : memref<144xf32, #tpu.memory_space<smem>>
    %87 = vector.broadcast %86 : f32 to vector<8x8xf32>
    %88 = arith.mulf %87, %7 : vector<8x8xf32>
    %89 = arith.addf %85, %88 : vector<8x8xf32>
    %c4 = arith.constant 4 : index
    %90 = memref.load %arg1[%c4] : memref<144xf32, #tpu.memory_space<smem>>
    %91 = vector.broadcast %90 : f32 to vector<8x8xf32>
    %92 = arith.mulf %91, %9 : vector<8x8xf32>
    %93 = arith.addf %89, %92 : vector<8x8xf32>
    %c5 = arith.constant 5 : index
    %94 = memref.load %arg1[%c5] : memref<144xf32, #tpu.memory_space<smem>>
    %95 = vector.broadcast %94 : f32 to vector<8x8xf32>
    %96 = arith.mulf %95, %11 : vector<8x8xf32>
    %97 = arith.addf %93, %96 : vector<8x8xf32>
    %c6 = arith.constant 6 : index
    %98 = memref.load %arg1[%c6] : memref<144xf32, #tpu.memory_space<smem>>
    %99 = vector.broadcast %98 : f32 to vector<8x8xf32>
    %100 = arith.mulf %99, %13 : vector<8x8xf32>
    %101 = arith.addf %97, %100 : vector<8x8xf32>
    %c7 = arith.constant 7 : index
    %102 = memref.load %arg1[%c7] : memref<144xf32, #tpu.memory_space<smem>>
    %103 = vector.broadcast %102 : f32 to vector<8x8xf32>
    %104 = arith.mulf %103, %15 : vector<8x8xf32>
    %105 = arith.addf %101, %104 : vector<8x8xf32>
    %c8 = arith.constant 8 : index
    %106 = memref.load %arg1[%c8] : memref<144xf32, #tpu.memory_space<smem>>
    %107 = vector.broadcast %106 : f32 to vector<8x8xf32>
    %108 = arith.mulf %107, %17 : vector<8x8xf32>
    %109 = arith.addf %105, %108 : vector<8x8xf32>
    %c9 = arith.constant 9 : index
    %110 = memref.load %arg1[%c9] : memref<144xf32, #tpu.memory_space<smem>>
    %111 = vector.broadcast %110 : f32 to vector<8x8xf32>
    %112 = arith.mulf %111, %19 : vector<8x8xf32>
    %113 = arith.addf %109, %112 : vector<8x8xf32>
    %c10 = arith.constant 10 : index
    %114 = memref.load %arg1[%c10] : memref<144xf32, #tpu.memory_space<smem>>
    %115 = vector.broadcast %114 : f32 to vector<8x8xf32>
    %116 = arith.mulf %115, %21 : vector<8x8xf32>
    %117 = arith.addf %113, %116 : vector<8x8xf32>
    %c11 = arith.constant 11 : index
    %118 = memref.load %arg1[%c11] : memref<144xf32, #tpu.memory_space<smem>>
    %119 = vector.broadcast %118 : f32 to vector<8x8xf32>
    %120 = arith.mulf %119, %23 : vector<8x8xf32>
    %121 = arith.addf %117, %120 : vector<8x8xf32>
    %c12 = arith.constant 12 : index
    %122 = memref.load %arg1[%c12] : memref<144xf32, #tpu.memory_space<smem>>
    %123 = vector.broadcast %122 : f32 to vector<8x8xf32>
    %124 = arith.mulf %123, %25 : vector<8x8xf32>
    %125 = arith.addf %121, %124 : vector<8x8xf32>
    %c13 = arith.constant 13 : index
    %126 = memref.load %arg1[%c13] : memref<144xf32, #tpu.memory_space<smem>>
    %127 = vector.broadcast %126 : f32 to vector<8x8xf32>
    %128 = arith.mulf %127, %27 : vector<8x8xf32>
    %129 = arith.addf %125, %128 : vector<8x8xf32>
    %c14 = arith.constant 14 : index
    %130 = memref.load %arg1[%c14] : memref<144xf32, #tpu.memory_space<smem>>
    %131 = vector.broadcast %130 : f32 to vector<8x8xf32>
    %132 = arith.mulf %131, %29 : vector<8x8xf32>
    %133 = arith.addf %129, %132 : vector<8x8xf32>
    %c15 = arith.constant 15 : index
    %134 = memref.load %arg1[%c15] : memref<144xf32, #tpu.memory_space<smem>>
    %135 = vector.broadcast %134 : f32 to vector<8x8xf32>
    %136 = arith.mulf %135, %31 : vector<8x8xf32>
    %137 = arith.addf %133, %136 : vector<8x8xf32>
    %c16 = arith.constant 16 : index
    %138 = memref.load %arg1[%c16] : memref<144xf32, #tpu.memory_space<smem>>
    %139 = vector.broadcast %138 : f32 to vector<8x8xf32>
    %140 = arith.mulf %139, %33 : vector<8x8xf32>
    %141 = arith.addf %137, %140 : vector<8x8xf32>
    %c17 = arith.constant 17 : index
    %142 = memref.load %arg1[%c17] : memref<144xf32, #tpu.memory_space<smem>>
    %143 = vector.broadcast %142 : f32 to vector<8x8xf32>
    %144 = arith.mulf %143, %35 : vector<8x8xf32>
    %145 = arith.addf %141, %144 : vector<8x8xf32>
    %c18 = arith.constant 18 : index
    %146 = memref.load %arg1[%c18] : memref<144xf32, #tpu.memory_space<smem>>
    %147 = vector.broadcast %146 : f32 to vector<8x8xf32>
    %148 = arith.mulf %147, %37 : vector<8x8xf32>
    %149 = arith.addf %145, %148 : vector<8x8xf32>
    %c19 = arith.constant 19 : index
    %150 = memref.load %arg1[%c19] : memref<144xf32, #tpu.memory_space<smem>>
    %151 = vector.broadcast %150 : f32 to vector<8x8xf32>
    %152 = arith.mulf %151, %39 : vector<8x8xf32>
    %153 = arith.addf %149, %152 : vector<8x8xf32>
    %c20 = arith.constant 20 : index
    %154 = memref.load %arg1[%c20] : memref<144xf32, #tpu.memory_space<smem>>
    %155 = vector.broadcast %154 : f32 to vector<8x8xf32>
    %156 = arith.mulf %155, %41 : vector<8x8xf32>
    %157 = arith.addf %153, %156 : vector<8x8xf32>
    %c21 = arith.constant 21 : index
    %158 = memref.load %arg1[%c21] : memref<144xf32, #tpu.memory_space<smem>>
    %159 = vector.broadcast %158 : f32 to vector<8x8xf32>
    %160 = arith.mulf %159, %43 : vector<8x8xf32>
    %161 = arith.addf %157, %160 : vector<8x8xf32>
    %c22 = arith.constant 22 : index
    %162 = memref.load %arg1[%c22] : memref<144xf32, #tpu.memory_space<smem>>
    %163 = vector.broadcast %162 : f32 to vector<8x8xf32>
    %164 = arith.mulf %163, %45 : vector<8x8xf32>
    %165 = arith.addf %161, %164 : vector<8x8xf32>
    %c23 = arith.constant 23 : index
    %166 = memref.load %arg1[%c23] : memref<144xf32, #tpu.memory_space<smem>>
    %167 = vector.broadcast %166 : f32 to vector<8x8xf32>
    %168 = arith.mulf %167, %47 : vector<8x8xf32>
    %169 = arith.addf %165, %168 : vector<8x8xf32>
    %c24 = arith.constant 24 : index
    %170 = memref.load %arg1[%c24] : memref<144xf32, #tpu.memory_space<smem>>
    %171 = vector.broadcast %170 : f32 to vector<8x8xf32>
    %172 = arith.mulf %171, %49 : vector<8x8xf32>
    %173 = arith.addf %169, %172 : vector<8x8xf32>
    %c25 = arith.constant 25 : index
    %174 = memref.load %arg1[%c25] : memref<144xf32, #tpu.memory_space<smem>>
    %175 = vector.broadcast %174 : f32 to vector<8x8xf32>
    %176 = arith.mulf %175, %51 : vector<8x8xf32>
    %177 = arith.addf %173, %176 : vector<8x8xf32>
    %c26 = arith.constant 26 : index
    %178 = memref.load %arg1[%c26] : memref<144xf32, #tpu.memory_space<smem>>
    %179 = vector.broadcast %178 : f32 to vector<8x8xf32>
    %180 = arith.mulf %179, %53 : vector<8x8xf32>
    %181 = arith.addf %177, %180 : vector<8x8xf32>
    %c27 = arith.constant 27 : index
    %182 = memref.load %arg1[%c27] : memref<144xf32, #tpu.memory_space<smem>>
    %183 = vector.broadcast %182 : f32 to vector<8x8xf32>
    %184 = arith.mulf %183, %55 : vector<8x8xf32>
    %185 = arith.addf %181, %184 : vector<8x8xf32>
    %c28 = arith.constant 28 : index
    %186 = memref.load %arg1[%c28] : memref<144xf32, #tpu.memory_space<smem>>
    %187 = vector.broadcast %186 : f32 to vector<8x8xf32>
    %188 = arith.mulf %187, %57 : vector<8x8xf32>
    %189 = arith.addf %185, %188 : vector<8x8xf32>
    %c29 = arith.constant 29 : index
    %190 = memref.load %arg1[%c29] : memref<144xf32, #tpu.memory_space<smem>>
    %191 = vector.broadcast %190 : f32 to vector<8x8xf32>
    %192 = arith.mulf %191, %59 : vector<8x8xf32>
    %193 = arith.addf %189, %192 : vector<8x8xf32>
    %c30 = arith.constant 30 : index
    %194 = memref.load %arg1[%c30] : memref<144xf32, #tpu.memory_space<smem>>
    %195 = vector.broadcast %194 : f32 to vector<8x8xf32>
    %196 = arith.mulf %195, %61 : vector<8x8xf32>
    %197 = arith.addf %193, %196 : vector<8x8xf32>
    %c31 = arith.constant 31 : index
    %198 = memref.load %arg1[%c31] : memref<144xf32, #tpu.memory_space<smem>>
    %199 = vector.broadcast %198 : f32 to vector<8x8xf32>
    %200 = arith.mulf %199, %63 : vector<8x8xf32>
    %201 = arith.addf %197, %200 : vector<8x8xf32>
    %c32 = arith.constant 32 : index
    %202 = memref.load %arg1[%c32] : memref<144xf32, #tpu.memory_space<smem>>
    %203 = vector.broadcast %202 : f32 to vector<8x8xf32>
    %204 = arith.mulf %203, %65 : vector<8x8xf32>
    %205 = arith.addf %201, %204 : vector<8x8xf32>
    %c33 = arith.constant 33 : index
    %206 = memref.load %arg1[%c33] : memref<144xf32, #tpu.memory_space<smem>>
    %207 = vector.broadcast %206 : f32 to vector<8x8xf32>
    %208 = arith.mulf %207, %67 : vector<8x8xf32>
    %209 = arith.addf %205, %208 : vector<8x8xf32>
    %c34 = arith.constant 34 : index
    %210 = memref.load %arg1[%c34] : memref<144xf32, #tpu.memory_space<smem>>
    %211 = vector.broadcast %210 : f32 to vector<8x8xf32>
    %212 = arith.mulf %211, %69 : vector<8x8xf32>
    %213 = arith.addf %209, %212 : vector<8x8xf32>
    %c35 = arith.constant 35 : index
    %214 = memref.load %arg1[%c35] : memref<144xf32, #tpu.memory_space<smem>>
    %215 = vector.broadcast %214 : f32 to vector<8x8xf32>
    %216 = arith.mulf %215, %71 : vector<8x8xf32>
    %217 = arith.addf %213, %216 : vector<8x8xf32>
    %c0_145 = arith.constant 0 : index
    %218 = memref.load %arg2[%c0_145] : memref<4xf32, #tpu.memory_space<smem>>
    %219 = vector.broadcast %218 : f32 to vector<8x8xf32>
    %220 = arith.mulf %217, %219 : vector<8x8xf32>
    %c0_146 = arith.constant 0 : index
    %221 = memref.load %arg3[%c0_146] : memref<4xf32, #tpu.memory_space<smem>>
    %222 = vector.broadcast %221 : f32 to vector<8x8xf32>
    %223 = arith.addf %220, %222 : vector<8x8xf32>
    %cst_147 = arith.constant 0.000000e+00 : f32
    %224 = vector.broadcast %cst_147 : f32 to vector<8x8xf32>
    %225 = arith.cmpf oge, %223, %224 : vector<8x8xf32>
    %226 = vector.broadcast %72 : f32 to vector<8x8xf32>
    %227 = arith.mulf %226, %223 : vector<8x8xf32>
    %228 = arith.select %225, %223, %227 : vector<8x8xi1>, vector<8x8xf32>
    %c0_148 = arith.constant 0 : index
    %c0_149 = arith.constant 0 : index
    %c0_150 = arith.constant 0 : index
    %c0_151 = arith.constant 0 : index
    %229 = vector.load %arg9[%c0_148, %c0_149, %c0_150, %c0_151] : memref<1x4x8x8xf32, #tpu.memory_space<vmem>>, vector<1x1x8x8xf32>
    %230 = vector.shape_cast %229 : vector<1x1x8x8xf32> to vector<8x8xf32>
    %231 = vector.shape_cast %228 : vector<8x8xf32> to vector<1x1x8x8xf32>
    tpu.vector_store %arg9[%c0_148, %c0_149, %c0_150, %c0_151], %231 {strides = array<i32>} : memref<1x4x8x8xf32, #tpu.memory_space<vmem>>, vector<1x1x8x8xf32>,
    %cst_152 = arith.constant 0.000000e+00 : f32
    %232 = vector.broadcast %cst_152 : f32 to vector<8x8xf32>
    %c36 = arith.constant 36 : index
    %233 = memref.load %arg1[%c36] : memref<144xf32, #tpu.memory_space<smem>>
    %234 = vector.broadcast %233 : f32 to vector<8x8xf32>
    %235 = arith.mulf %234, %1 : vector<8x8xf32>
    %236 = arith.addf %232, %235 : vector<8x8xf32>
    %c37 = arith.constant 37 : index
    %237 = memref.load %arg1[%c37] : memref<144xf32, #tpu.memory_space<smem>>
    %238 = vector.broadcast %237 : f32 to vector<8x8xf32>
    %239 = arith.mulf %238, %3 : vector<8x8xf32>
    %240 = arith.addf %236, %239 : vector<8x8xf32>
    %c38 = arith.constant 38 : index
    %241 = memref.load %arg1[%c38] : memref<144xf32, #tpu.memory_space<smem>>
    %242 = vector.broadcast %241 : f32 to vector<8x8xf32>
    %243 = arith.mulf %242, %5 : vector<8x8xf32>
    %244 = arith.addf %240, %243 : vector<8x8xf32>
    %c39 = arith.constant 39 : index
    %245 = memref.load %arg1[%c39] : memref<144xf32, #tpu.memory_space<smem>>
    %246 = vector.broadcast %245 : f32 to vector<8x8xf32>
    %247 = arith.mulf %246, %7 : vector<8x8xf32>
    %248 = arith.addf %244, %247 : vector<8x8xf32>
    %c40 = arith.constant 40 : index
    %249 = memref.load %arg1[%c40] : memref<144xf32, #tpu.memory_space<smem>>
    %250 = vector.broadcast %249 : f32 to vector<8x8xf32>
    %251 = arith.mulf %250, %9 : vector<8x8xf32>
    %252 = arith.addf %248, %251 : vector<8x8xf32>
    %c41 = arith.constant 41 : index
    %253 = memref.load %arg1[%c41] : memref<144xf32, #tpu.memory_space<smem>>
    %254 = vector.broadcast %253 : f32 to vector<8x8xf32>
    %255 = arith.mulf %254, %11 : vector<8x8xf32>
    %256 = arith.addf %252, %255 : vector<8x8xf32>
    %c42 = arith.constant 42 : index
    %257 = memref.load %arg1[%c42] : memref<144xf32, #tpu.memory_space<smem>>
    %258 = vector.broadcast %257 : f32 to vector<8x8xf32>
    %259 = arith.mulf %258, %13 : vector<8x8xf32>
    %260 = arith.addf %256, %259 : vector<8x8xf32>
    %c43 = arith.constant 43 : index
    %261 = memref.load %arg1[%c43] : memref<144xf32, #tpu.memory_space<smem>>
    %262 = vector.broadcast %261 : f32 to vector<8x8xf32>
    %263 = arith.mulf %262, %15 : vector<8x8xf32>
    %264 = arith.addf %260, %263 : vector<8x8xf32>
    %c44 = arith.constant 44 : index
    %265 = memref.load %arg1[%c44] : memref<144xf32, #tpu.memory_space<smem>>
    %266 = vector.broadcast %265 : f32 to vector<8x8xf32>
    %267 = arith.mulf %266, %17 : vector<8x8xf32>
    %268 = arith.addf %264, %267 : vector<8x8xf32>
    %c45 = arith.constant 45 : index
    %269 = memref.load %arg1[%c45] : memref<144xf32, #tpu.memory_space<smem>>
    %270 = vector.broadcast %269 : f32 to vector<8x8xf32>
    %271 = arith.mulf %270, %19 : vector<8x8xf32>
    %272 = arith.addf %268, %271 : vector<8x8xf32>
    %c46 = arith.constant 46 : index
    %273 = memref.load %arg1[%c46] : memref<144xf32, #tpu.memory_space<smem>>
    %274 = vector.broadcast %273 : f32 to vector<8x8xf32>
    %275 = arith.mulf %274, %21 : vector<8x8xf32>
    %276 = arith.addf %272, %275 : vector<8x8xf32>
    %c47 = arith.constant 47 : index
    %277 = memref.load %arg1[%c47] : memref<144xf32, #tpu.memory_space<smem>>
    %278 = vector.broadcast %277 : f32 to vector<8x8xf32>
    %279 = arith.mulf %278, %23 : vector<8x8xf32>
    %280 = arith.addf %276, %279 : vector<8x8xf32>
    %c48 = arith.constant 48 : index
    %281 = memref.load %arg1[%c48] : memref<144xf32, #tpu.memory_space<smem>>
    %282 = vector.broadcast %281 : f32 to vector<8x8xf32>
    %283 = arith.mulf %282, %25 : vector<8x8xf32>
    %284 = arith.addf %280, %283 : vector<8x8xf32>
    %c49 = arith.constant 49 : index
    %285 = memref.load %arg1[%c49] : memref<144xf32, #tpu.memory_space<smem>>
    %286 = vector.broadcast %285 : f32 to vector<8x8xf32>
    %287 = arith.mulf %286, %27 : vector<8x8xf32>
    %288 = arith.addf %284, %287 : vector<8x8xf32>
    %c50 = arith.constant 50 : index
    %289 = memref.load %arg1[%c50] : memref<144xf32, #tpu.memory_space<smem>>
    %290 = vector.broadcast %289 : f32 to vector<8x8xf32>
    %291 = arith.mulf %290, %29 : vector<8x8xf32>
    %292 = arith.addf %288, %291 : vector<8x8xf32>
    %c51 = arith.constant 51 : index
    %293 = memref.load %arg1[%c51] : memref<144xf32, #tpu.memory_space<smem>>
    %294 = vector.broadcast %293 : f32 to vector<8x8xf32>
    %295 = arith.mulf %294, %31 : vector<8x8xf32>
    %296 = arith.addf %292, %295 : vector<8x8xf32>
    %c52 = arith.constant 52 : index
    %297 = memref.load %arg1[%c52] : memref<144xf32, #tpu.memory_space<smem>>
    %298 = vector.broadcast %297 : f32 to vector<8x8xf32>
    %299 = arith.mulf %298, %33 : vector<8x8xf32>
    %300 = arith.addf %296, %299 : vector<8x8xf32>
    %c53 = arith.constant 53 : index
    %301 = memref.load %arg1[%c53] : memref<144xf32, #tpu.memory_space<smem>>
    %302 = vector.broadcast %301 : f32 to vector<8x8xf32>
    %303 = arith.mulf %302, %35 : vector<8x8xf32>
    %304 = arith.addf %300, %303 : vector<8x8xf32>
    %c54 = arith.constant 54 : index
    %305 = memref.load %arg1[%c54] : memref<144xf32, #tpu.memory_space<smem>>
    %306 = vector.broadcast %305 : f32 to vector<8x8xf32>
    %307 = arith.mulf %306, %37 : vector<8x8xf32>
    %308 = arith.addf %304, %307 : vector<8x8xf32>
    %c55 = arith.constant 55 : index
    %309 = memref.load %arg1[%c55] : memref<144xf32, #tpu.memory_space<smem>>
    %310 = vector.broadcast %309 : f32 to vector<8x8xf32>
    %311 = arith.mulf %310, %39 : vector<8x8xf32>
    %312 = arith.addf %308, %311 : vector<8x8xf32>
    %c56 = arith.constant 56 : index
    %313 = memref.load %arg1[%c56] : memref<144xf32, #tpu.memory_space<smem>>
    %314 = vector.broadcast %313 : f32 to vector<8x8xf32>
    %315 = arith.mulf %314, %41 : vector<8x8xf32>
    %316 = arith.addf %312, %315 : vector<8x8xf32>
    %c57 = arith.constant 57 : index
    %317 = memref.load %arg1[%c57] : memref<144xf32, #tpu.memory_space<smem>>
    %318 = vector.broadcast %317 : f32 to vector<8x8xf32>
    %319 = arith.mulf %318, %43 : vector<8x8xf32>
    %320 = arith.addf %316, %319 : vector<8x8xf32>
    %c58 = arith.constant 58 : index
    %321 = memref.load %arg1[%c58] : memref<144xf32, #tpu.memory_space<smem>>
    %322 = vector.broadcast %321 : f32 to vector<8x8xf32>
    %323 = arith.mulf %322, %45 : vector<8x8xf32>
    %324 = arith.addf %320, %323 : vector<8x8xf32>
    %c59 = arith.constant 59 : index
    %325 = memref.load %arg1[%c59] : memref<144xf32, #tpu.memory_space<smem>>
    %326 = vector.broadcast %325 : f32 to vector<8x8xf32>
    %327 = arith.mulf %326, %47 : vector<8x8xf32>
    %328 = arith.addf %324, %327 : vector<8x8xf32>
    %c60 = arith.constant 60 : index
    %329 = memref.load %arg1[%c60] : memref<144xf32, #tpu.memory_space<smem>>
    %330 = vector.broadcast %329 : f32 to vector<8x8xf32>
    %331 = arith.mulf %330, %49 : vector<8x8xf32>
    %332 = arith.addf %328, %331 : vector<8x8xf32>
    %c61 = arith.constant 61 : index
    %333 = memref.load %arg1[%c61] : memref<144xf32, #tpu.memory_space<smem>>
    %334 = vector.broadcast %333 : f32 to vector<8x8xf32>
    %335 = arith.mulf %334, %51 : vector<8x8xf32>
    %336 = arith.addf %332, %335 : vector<8x8xf32>
    %c62 = arith.constant 62 : index
    %337 = memref.load %arg1[%c62] : memref<144xf32, #tpu.memory_space<smem>>
    %338 = vector.broadcast %337 : f32 to vector<8x8xf32>
    %339 = arith.mulf %338, %53 : vector<8x8xf32>
    %340 = arith.addf %336, %339 : vector<8x8xf32>
    %c63 = arith.constant 63 : index
    %341 = memref.load %arg1[%c63] : memref<144xf32, #tpu.memory_space<smem>>
    %342 = vector.broadcast %341 : f32 to vector<8x8xf32>
    %343 = arith.mulf %342, %55 : vector<8x8xf32>
    %344 = arith.addf %340, %343 : vector<8x8xf32>
    %c64 = arith.constant 64 : index
    %345 = memref.load %arg1[%c64] : memref<144xf32, #tpu.memory_space<smem>>
    %346 = vector.broadcast %345 : f32 to vector<8x8xf32>
    %347 = arith.mulf %346, %57 : vector<8x8xf32>
    %348 = arith.addf %344, %347 : vector<8x8xf32>
    %c65 = arith.constant 65 : index
    %349 = memref.load %arg1[%c65] : memref<144xf32, #tpu.memory_space<smem>>
    %350 = vector.broadcast %349 : f32 to vector<8x8xf32>
    %351 = arith.mulf %350, %59 : vector<8x8xf32>
    %352 = arith.addf %348, %351 : vector<8x8xf32>
    %c66 = arith.constant 66 : index
    %353 = memref.load %arg1[%c66] : memref<144xf32, #tpu.memory_space<smem>>
    %354 = vector.broadcast %353 : f32 to vector<8x8xf32>
    %355 = arith.mulf %354, %61 : vector<8x8xf32>
    %356 = arith.addf %352, %355 : vector<8x8xf32>
    %c67 = arith.constant 67 : index
    %357 = memref.load %arg1[%c67] : memref<144xf32, #tpu.memory_space<smem>>
    %358 = vector.broadcast %357 : f32 to vector<8x8xf32>
    %359 = arith.mulf %358, %63 : vector<8x8xf32>
    %360 = arith.addf %356, %359 : vector<8x8xf32>
    %c68 = arith.constant 68 : index
    %361 = memref.load %arg1[%c68] : memref<144xf32, #tpu.memory_space<smem>>
    %362 = vector.broadcast %361 : f32 to vector<8x8xf32>
    %363 = arith.mulf %362, %65 : vector<8x8xf32>
    %364 = arith.addf %360, %363 : vector<8x8xf32>
    %c69 = arith.constant 69 : index
    %365 = memref.load %arg1[%c69] : memref<144xf32, #tpu.memory_space<smem>>
    %366 = vector.broadcast %365 : f32 to vector<8x8xf32>
    %367 = arith.mulf %366, %67 : vector<8x8xf32>
    %368 = arith.addf %364, %367 : vector<8x8xf32>
    %c70 = arith.constant 70 : index
    %369 = memref.load %arg1[%c70] : memref<144xf32, #tpu.memory_space<smem>>
    %370 = vector.broadcast %369 : f32 to vector<8x8xf32>
    %371 = arith.mulf %370, %69 : vector<8x8xf32>
    %372 = arith.addf %368, %371 : vector<8x8xf32>
    %c71 = arith.constant 71 : index
    %373 = memref.load %arg1[%c71] : memref<144xf32, #tpu.memory_space<smem>>
    %374 = vector.broadcast %373 : f32 to vector<8x8xf32>
    %375 = arith.mulf %374, %71 : vector<8x8xf32>
    %376 = arith.addf %372, %375 : vector<8x8xf32>
    %c1_153 = arith.constant 1 : index
    %377 = memref.load %arg2[%c1_153] : memref<4xf32, #tpu.memory_space<smem>>
    %378 = vector.broadcast %377 : f32 to vector<8x8xf32>
    %379 = arith.mulf %376, %378 : vector<8x8xf32>
    %c1_154 = arith.constant 1 : index
    %380 = memref.load %arg3[%c1_154] : memref<4xf32, #tpu.memory_space<smem>>
    %381 = vector.broadcast %380 : f32 to vector<8x8xf32>
    %382 = arith.addf %379, %381 : vector<8x8xf32>
    %cst_155 = arith.constant 0.000000e+00 : f32
    %383 = vector.broadcast %cst_155 : f32 to vector<8x8xf32>
    %384 = arith.cmpf oge, %382, %383 : vector<8x8xf32>
    %385 = vector.broadcast %72 : f32 to vector<8x8xf32>
    %386 = arith.mulf %385, %382 : vector<8x8xf32>
    %387 = arith.select %384, %382, %386 : vector<8x8xi1>, vector<8x8xf32>
    %c0_156 = arith.constant 0 : index
    %c1_157 = arith.constant 1 : index
    %c0_158 = arith.constant 0 : index
    %c0_159 = arith.constant 0 : index
    %388 = vector.load %arg9[%c0_156, %c1_157, %c0_158, %c0_159] : memref<1x4x8x8xf32, #tpu.memory_space<vmem>>, vector<1x1x8x8xf32>
    %389 = vector.shape_cast %388 : vector<1x1x8x8xf32> to vector<8x8xf32>
    %390 = vector.shape_cast %387 : vector<8x8xf32> to vector<1x1x8x8xf32>
    tpu.vector_store %arg9[%c0_156, %c1_157, %c0_158, %c0_159], %390 {strides = array<i32>} : memref<1x4x8x8xf32, #tpu.memory_space<vmem>>, vector<1x1x8x8xf32>,
    %cst_160 = arith.constant 0.000000e+00 : f32
    %391 = vector.broadcast %cst_160 : f32 to vector<8x8xf32>
    %c72 = arith.constant 72 : index
    %392 = memref.load %arg1[%c72] : memref<144xf32, #tpu.memory_space<smem>>
    %393 = vector.broadcast %392 : f32 to vector<8x8xf32>
    %394 = arith.mulf %393, %1 : vector<8x8xf32>
    %395 = arith.addf %391, %394 : vector<8x8xf32>
    %c73 = arith.constant 73 : index
    %396 = memref.load %arg1[%c73] : memref<144xf32, #tpu.memory_space<smem>>
    %397 = vector.broadcast %396 : f32 to vector<8x8xf32>
    %398 = arith.mulf %397, %3 : vector<8x8xf32>
    %399 = arith.addf %395, %398 : vector<8x8xf32>
    %c74 = arith.constant 74 : index
    %400 = memref.load %arg1[%c74] : memref<144xf32, #tpu.memory_space<smem>>
    %401 = vector.broadcast %400 : f32 to vector<8x8xf32>
    %402 = arith.mulf %401, %5 : vector<8x8xf32>
    %403 = arith.addf %399, %402 : vector<8x8xf32>
    %c75 = arith.constant 75 : index
    %404 = memref.load %arg1[%c75] : memref<144xf32, #tpu.memory_space<smem>>
    %405 = vector.broadcast %404 : f32 to vector<8x8xf32>
    %406 = arith.mulf %405, %7 : vector<8x8xf32>
    %407 = arith.addf %403, %406 : vector<8x8xf32>
    %c76 = arith.constant 76 : index
    %408 = memref.load %arg1[%c76] : memref<144xf32, #tpu.memory_space<smem>>
    %409 = vector.broadcast %408 : f32 to vector<8x8xf32>
    %410 = arith.mulf %409, %9 : vector<8x8xf32>
    %411 = arith.addf %407, %410 : vector<8x8xf32>
    %c77 = arith.constant 77 : index
    %412 = memref.load %arg1[%c77] : memref<144xf32, #tpu.memory_space<smem>>
    %413 = vector.broadcast %412 : f32 to vector<8x8xf32>
    %414 = arith.mulf %413, %11 : vector<8x8xf32>
    %415 = arith.addf %411, %414 : vector<8x8xf32>
    %c78 = arith.constant 78 : index
    %416 = memref.load %arg1[%c78] : memref<144xf32, #tpu.memory_space<smem>>
    %417 = vector.broadcast %416 : f32 to vector<8x8xf32>
    %418 = arith.mulf %417, %13 : vector<8x8xf32>
    %419 = arith.addf %415, %418 : vector<8x8xf32>
    %c79 = arith.constant 79 : index
    %420 = memref.load %arg1[%c79] : memref<144xf32, #tpu.memory_space<smem>>
    %421 = vector.broadcast %420 : f32 to vector<8x8xf32>
    %422 = arith.mulf %421, %15 : vector<8x8xf32>
    %423 = arith.addf %419, %422 : vector<8x8xf32>
    %c80 = arith.constant 80 : index
    %424 = memref.load %arg1[%c80] : memref<144xf32, #tpu.memory_space<smem>>
    %425 = vector.broadcast %424 : f32 to vector<8x8xf32>
    %426 = arith.mulf %425, %17 : vector<8x8xf32>
    %427 = arith.addf %423, %426 : vector<8x8xf32>
    %c81 = arith.constant 81 : index
    %428 = memref.load %arg1[%c81] : memref<144xf32, #tpu.memory_space<smem>>
    %429 = vector.broadcast %428 : f32 to vector<8x8xf32>
    %430 = arith.mulf %429, %19 : vector<8x8xf32>
    %431 = arith.addf %427, %430 : vector<8x8xf32>
    %c82 = arith.constant 82 : index
    %432 = memref.load %arg1[%c82] : memref<144xf32, #tpu.memory_space<smem>>
    %433 = vector.broadcast %432 : f32 to vector<8x8xf32>
    %434 = arith.mulf %433, %21 : vector<8x8xf32>
    %435 = arith.addf %431, %434 : vector<8x8xf32>
    %c83 = arith.constant 83 : index
    %436 = memref.load %arg1[%c83] : memref<144xf32, #tpu.memory_space<smem>>
    %437 = vector.broadcast %436 : f32 to vector<8x8xf32>
    %438 = arith.mulf %437, %23 : vector<8x8xf32>
    %439 = arith.addf %435, %438 : vector<8x8xf32>
    %c84 = arith.constant 84 : index
    %440 = memref.load %arg1[%c84] : memref<144xf32, #tpu.memory_space<smem>>
    %441 = vector.broadcast %440 : f32 to vector<8x8xf32>
    %442 = arith.mulf %441, %25 : vector<8x8xf32>
    %443 = arith.addf %439, %442 : vector<8x8xf32>
    %c85 = arith.constant 85 : index
    %444 = memref.load %arg1[%c85] : memref<144xf32, #tpu.memory_space<smem>>
    %445 = vector.broadcast %444 : f32 to vector<8x8xf32>
    %446 = arith.mulf %445, %27 : vector<8x8xf32>
    %447 = arith.addf %443, %446 : vector<8x8xf32>
    %c86 = arith.constant 86 : index
    %448 = memref.load %arg1[%c86] : memref<144xf32, #tpu.memory_space<smem>>
    %449 = vector.broadcast %448 : f32 to vector<8x8xf32>
    %450 = arith.mulf %449, %29 : vector<8x8xf32>
    %451 = arith.addf %447, %450 : vector<8x8xf32>
    %c87 = arith.constant 87 : index
    %452 = memref.load %arg1[%c87] : memref<144xf32, #tpu.memory_space<smem>>
    %453 = vector.broadcast %452 : f32 to vector<8x8xf32>
    %454 = arith.mulf %453, %31 : vector<8x8xf32>
    %455 = arith.addf %451, %454 : vector<8x8xf32>
    %c88 = arith.constant 88 : index
    %456 = memref.load %arg1[%c88] : memref<144xf32, #tpu.memory_space<smem>>
    %457 = vector.broadcast %456 : f32 to vector<8x8xf32>
    %458 = arith.mulf %457, %33 : vector<8x8xf32>
    %459 = arith.addf %455, %458 : vector<8x8xf32>
    %c89 = arith.constant 89 : index
    %460 = memref.load %arg1[%c89] : memref<144xf32, #tpu.memory_space<smem>>
    %461 = vector.broadcast %460 : f32 to vector<8x8xf32>
    %462 = arith.mulf %461, %35 : vector<8x8xf32>
    %463 = arith.addf %459, %462 : vector<8x8xf32>
    %c90 = arith.constant 90 : index
    %464 = memref.load %arg1[%c90] : memref<144xf32, #tpu.memory_space<smem>>
    %465 = vector.broadcast %464 : f32 to vector<8x8xf32>
    %466 = arith.mulf %465, %37 : vector<8x8xf32>
    %467 = arith.addf %463, %466 : vector<8x8xf32>
    %c91 = arith.constant 91 : index
    %468 = memref.load %arg1[%c91] : memref<144xf32, #tpu.memory_space<smem>>
    %469 = vector.broadcast %468 : f32 to vector<8x8xf32>
    %470 = arith.mulf %469, %39 : vector<8x8xf32>
    %471 = arith.addf %467, %470 : vector<8x8xf32>
    %c92 = arith.constant 92 : index
    %472 = memref.load %arg1[%c92] : memref<144xf32, #tpu.memory_space<smem>>
    %473 = vector.broadcast %472 : f32 to vector<8x8xf32>
    %474 = arith.mulf %473, %41 : vector<8x8xf32>
    %475 = arith.addf %471, %474 : vector<8x8xf32>
    %c93 = arith.constant 93 : index
    %476 = memref.load %arg1[%c93] : memref<144xf32, #tpu.memory_space<smem>>
    %477 = vector.broadcast %476 : f32 to vector<8x8xf32>
    %478 = arith.mulf %477, %43 : vector<8x8xf32>
    %479 = arith.addf %475, %478 : vector<8x8xf32>
    %c94 = arith.constant 94 : index
    %480 = memref.load %arg1[%c94] : memref<144xf32, #tpu.memory_space<smem>>
    %481 = vector.broadcast %480 : f32 to vector<8x8xf32>
    %482 = arith.mulf %481, %45 : vector<8x8xf32>
    %483 = arith.addf %479, %482 : vector<8x8xf32>
    %c95 = arith.constant 95 : index
    %484 = memref.load %arg1[%c95] : memref<144xf32, #tpu.memory_space<smem>>
    %485 = vector.broadcast %484 : f32 to vector<8x8xf32>
    %486 = arith.mulf %485, %47 : vector<8x8xf32>
    %487 = arith.addf %483, %486 : vector<8x8xf32>
    %c96 = arith.constant 96 : index
    %488 = memref.load %arg1[%c96] : memref<144xf32, #tpu.memory_space<smem>>
    %489 = vector.broadcast %488 : f32 to vector<8x8xf32>
    %490 = arith.mulf %489, %49 : vector<8x8xf32>
    %491 = arith.addf %487, %490 : vector<8x8xf32>
    %c97 = arith.constant 97 : index
    %492 = memref.load %arg1[%c97] : memref<144xf32, #tpu.memory_space<smem>>
    %493 = vector.broadcast %492 : f32 to vector<8x8xf32>
    %494 = arith.mulf %493, %51 : vector<8x8xf32>
    %495 = arith.addf %491, %494 : vector<8x8xf32>
    %c98 = arith.constant 98 : index
    %496 = memref.load %arg1[%c98] : memref<144xf32, #tpu.memory_space<smem>>
    %497 = vector.broadcast %496 : f32 to vector<8x8xf32>
    %498 = arith.mulf %497, %53 : vector<8x8xf32>
    %499 = arith.addf %495, %498 : vector<8x8xf32>
    %c99 = arith.constant 99 : index
    %500 = memref.load %arg1[%c99] : memref<144xf32, #tpu.memory_space<smem>>
    %501 = vector.broadcast %500 : f32 to vector<8x8xf32>
    %502 = arith.mulf %501, %55 : vector<8x8xf32>
    %503 = arith.addf %499, %502 : vector<8x8xf32>
    %c100 = arith.constant 100 : index
    %504 = memref.load %arg1[%c100] : memref<144xf32, #tpu.memory_space<smem>>
    %505 = vector.broadcast %504 : f32 to vector<8x8xf32>
    %506 = arith.mulf %505, %57 : vector<8x8xf32>
    %507 = arith.addf %503, %506 : vector<8x8xf32>
    %c101 = arith.constant 101 : index
    %508 = memref.load %arg1[%c101] : memref<144xf32, #tpu.memory_space<smem>>
    %509 = vector.broadcast %508 : f32 to vector<8x8xf32>
    %510 = arith.mulf %509, %59 : vector<8x8xf32>
    %511 = arith.addf %507, %510 : vector<8x8xf32>
    %c102 = arith.constant 102 : index
    %512 = memref.load %arg1[%c102] : memref<144xf32, #tpu.memory_space<smem>>
    %513 = vector.broadcast %512 : f32 to vector<8x8xf32>
    %514 = arith.mulf %513, %61 : vector<8x8xf32>
    %515 = arith.addf %511, %514 : vector<8x8xf32>
    %c103 = arith.constant 103 : index
    %516 = memref.load %arg1[%c103] : memref<144xf32, #tpu.memory_space<smem>>
    %517 = vector.broadcast %516 : f32 to vector<8x8xf32>
    %518 = arith.mulf %517, %63 : vector<8x8xf32>
    %519 = arith.addf %515, %518 : vector<8x8xf32>
    %c104 = arith.constant 104 : index
    %520 = memref.load %arg1[%c104] : memref<144xf32, #tpu.memory_space<smem>>
    %521 = vector.broadcast %520 : f32 to vector<8x8xf32>
    %522 = arith.mulf %521, %65 : vector<8x8xf32>
    %523 = arith.addf %519, %522 : vector<8x8xf32>
    %c105 = arith.constant 105 : index
    %524 = memref.load %arg1[%c105] : memref<144xf32, #tpu.memory_space<smem>>
    %525 = vector.broadcast %524 : f32 to vector<8x8xf32>
    %526 = arith.mulf %525, %67 : vector<8x8xf32>
    %527 = arith.addf %523, %526 : vector<8x8xf32>
    %c106 = arith.constant 106 : index
    %528 = memref.load %arg1[%c106] : memref<144xf32, #tpu.memory_space<smem>>
    %529 = vector.broadcast %528 : f32 to vector<8x8xf32>
    %530 = arith.mulf %529, %69 : vector<8x8xf32>
    %531 = arith.addf %527, %530 : vector<8x8xf32>
    %c107 = arith.constant 107 : index
    %532 = memref.load %arg1[%c107] : memref<144xf32, #tpu.memory_space<smem>>
    %533 = vector.broadcast %532 : f32 to vector<8x8xf32>
    %534 = arith.mulf %533, %71 : vector<8x8xf32>
    %535 = arith.addf %531, %534 : vector<8x8xf32>
    %c2_161 = arith.constant 2 : index
    %536 = memref.load %arg2[%c2_161] : memref<4xf32, #tpu.memory_space<smem>>
    %537 = vector.broadcast %536 : f32 to vector<8x8xf32>
    %538 = arith.mulf %535, %537 : vector<8x8xf32>
    %c2_162 = arith.constant 2 : index
    %539 = memref.load %arg3[%c2_162] : memref<4xf32, #tpu.memory_space<smem>>
    %540 = vector.broadcast %539 : f32 to vector<8x8xf32>
    %541 = arith.addf %538, %540 : vector<8x8xf32>
    %cst_163 = arith.constant 0.000000e+00 : f32
    %542 = vector.broadcast %cst_163 : f32 to vector<8x8xf32>
    %543 = arith.cmpf oge, %541, %542 : vector<8x8xf32>
    %544 = vector.broadcast %72 : f32 to vector<8x8xf32>
    %545 = arith.mulf %544, %541 : vector<8x8xf32>
    %546 = arith.select %543, %541, %545 : vector<8x8xi1>, vector<8x8xf32>
    %c0_164 = arith.constant 0 : index
    %c2_165 = arith.constant 2 : index
    %c0_166 = arith.constant 0 : index
    %c0_167 = arith.constant 0 : index
    %547 = vector.load %arg9[%c0_164, %c2_165, %c0_166, %c0_167] : memref<1x4x8x8xf32, #tpu.memory_space<vmem>>, vector<1x1x8x8xf32>
    %548 = vector.shape_cast %547 : vector<1x1x8x8xf32> to vector<8x8xf32>
    %549 = vector.shape_cast %546 : vector<8x8xf32> to vector<1x1x8x8xf32>
    tpu.vector_store %arg9[%c0_164, %c2_165, %c0_166, %c0_167], %549 {strides = array<i32>} : memref<1x4x8x8xf32, #tpu.memory_space<vmem>>, vector<1x1x8x8xf32>,
    %cst_168 = arith.constant 0.000000e+00 : f32
    %550 = vector.broadcast %cst_168 : f32 to vector<8x8xf32>
    %c108 = arith.constant 108 : index
    %551 = memref.load %arg1[%c108] : memref<144xf32, #tpu.memory_space<smem>>
    %552 = vector.broadcast %551 : f32 to vector<8x8xf32>
    %553 = arith.mulf %552, %1 : vector<8x8xf32>
    %554 = arith.addf %550, %553 : vector<8x8xf32>
    %c109 = arith.constant 109 : index
    %555 = memref.load %arg1[%c109] : memref<144xf32, #tpu.memory_space<smem>>
    %556 = vector.broadcast %555 : f32 to vector<8x8xf32>
    %557 = arith.mulf %556, %3 : vector<8x8xf32>
    %558 = arith.addf %554, %557 : vector<8x8xf32>
    %c110 = arith.constant 110 : index
    %559 = memref.load %arg1[%c110] : memref<144xf32, #tpu.memory_space<smem>>
    %560 = vector.broadcast %559 : f32 to vector<8x8xf32>
    %561 = arith.mulf %560, %5 : vector<8x8xf32>
    %562 = arith.addf %558, %561 : vector<8x8xf32>
    %c111 = arith.constant 111 : index
    %563 = memref.load %arg1[%c111] : memref<144xf32, #tpu.memory_space<smem>>
    %564 = vector.broadcast %563 : f32 to vector<8x8xf32>
    %565 = arith.mulf %564, %7 : vector<8x8xf32>
    %566 = arith.addf %562, %565 : vector<8x8xf32>
    %c112 = arith.constant 112 : index
    %567 = memref.load %arg1[%c112] : memref<144xf32, #tpu.memory_space<smem>>
    %568 = vector.broadcast %567 : f32 to vector<8x8xf32>
    %569 = arith.mulf %568, %9 : vector<8x8xf32>
    %570 = arith.addf %566, %569 : vector<8x8xf32>
    %c113 = arith.constant 113 : index
    %571 = memref.load %arg1[%c113] : memref<144xf32, #tpu.memory_space<smem>>
    %572 = vector.broadcast %571 : f32 to vector<8x8xf32>
    %573 = arith.mulf %572, %11 : vector<8x8xf32>
    %574 = arith.addf %570, %573 : vector<8x8xf32>
    %c114 = arith.constant 114 : index
    %575 = memref.load %arg1[%c114] : memref<144xf32, #tpu.memory_space<smem>>
    %576 = vector.broadcast %575 : f32 to vector<8x8xf32>
    %577 = arith.mulf %576, %13 : vector<8x8xf32>
    %578 = arith.addf %574, %577 : vector<8x8xf32>
    %c115 = arith.constant 115 : index
    %579 = memref.load %arg1[%c115] : memref<144xf32, #tpu.memory_space<smem>>
    %580 = vector.broadcast %579 : f32 to vector<8x8xf32>
    %581 = arith.mulf %580, %15 : vector<8x8xf32>
    %582 = arith.addf %578, %581 : vector<8x8xf32>
    %c116 = arith.constant 116 : index
    %583 = memref.load %arg1[%c116] : memref<144xf32, #tpu.memory_space<smem>>
    %584 = vector.broadcast %583 : f32 to vector<8x8xf32>
    %585 = arith.mulf %584, %17 : vector<8x8xf32>
    %586 = arith.addf %582, %585 : vector<8x8xf32>
    %c117 = arith.constant 117 : index
    %587 = memref.load %arg1[%c117] : memref<144xf32, #tpu.memory_space<smem>>
    %588 = vector.broadcast %587 : f32 to vector<8x8xf32>
    %589 = arith.mulf %588, %19 : vector<8x8xf32>
    %590 = arith.addf %586, %589 : vector<8x8xf32>
    %c118 = arith.constant 118 : index
    %591 = memref.load %arg1[%c118] : memref<144xf32, #tpu.memory_space<smem>>
    %592 = vector.broadcast %591 : f32 to vector<8x8xf32>
    %593 = arith.mulf %592, %21 : vector<8x8xf32>
    %594 = arith.addf %590, %593 : vector<8x8xf32>
    %c119 = arith.constant 119 : index
    %595 = memref.load %arg1[%c119] : memref<144xf32, #tpu.memory_space<smem>>
    %596 = vector.broadcast %595 : f32 to vector<8x8xf32>
    %597 = arith.mulf %596, %23 : vector<8x8xf32>
    %598 = arith.addf %594, %597 : vector<8x8xf32>
    %c120 = arith.constant 120 : index
    %599 = memref.load %arg1[%c120] : memref<144xf32, #tpu.memory_space<smem>>
    %600 = vector.broadcast %599 : f32 to vector<8x8xf32>
    %601 = arith.mulf %600, %25 : vector<8x8xf32>
    %602 = arith.addf %598, %601 : vector<8x8xf32>
    %c121 = arith.constant 121 : index
    %603 = memref.load %arg1[%c121] : memref<144xf32, #tpu.memory_space<smem>>
    %604 = vector.broadcast %603 : f32 to vector<8x8xf32>
    %605 = arith.mulf %604, %27 : vector<8x8xf32>
    %606 = arith.addf %602, %605 : vector<8x8xf32>
    %c122 = arith.constant 122 : index
    %607 = memref.load %arg1[%c122] : memref<144xf32, #tpu.memory_space<smem>>
    %608 = vector.broadcast %607 : f32 to vector<8x8xf32>
    %609 = arith.mulf %608, %29 : vector<8x8xf32>
    %610 = arith.addf %606, %609 : vector<8x8xf32>
    %c123 = arith.constant 123 : index
    %611 = memref.load %arg1[%c123] : memref<144xf32, #tpu.memory_space<smem>>
    %612 = vector.broadcast %611 : f32 to vector<8x8xf32>
    %613 = arith.mulf %612, %31 : vector<8x8xf32>
    %614 = arith.addf %610, %613 : vector<8x8xf32>
    %c124 = arith.constant 124 : index
    %615 = memref.load %arg1[%c124] : memref<144xf32, #tpu.memory_space<smem>>
    %616 = vector.broadcast %615 : f32 to vector<8x8xf32>
    %617 = arith.mulf %616, %33 : vector<8x8xf32>
    %618 = arith.addf %614, %617 : vector<8x8xf32>
    %c125 = arith.constant 125 : index
    %619 = memref.load %arg1[%c125] : memref<144xf32, #tpu.memory_space<smem>>
    %620 = vector.broadcast %619 : f32 to vector<8x8xf32>
    %621 = arith.mulf %620, %35 : vector<8x8xf32>
    %622 = arith.addf %618, %621 : vector<8x8xf32>
    %c126 = arith.constant 126 : index
    %623 = memref.load %arg1[%c126] : memref<144xf32, #tpu.memory_space<smem>>
    %624 = vector.broadcast %623 : f32 to vector<8x8xf32>
    %625 = arith.mulf %624, %37 : vector<8x8xf32>
    %626 = arith.addf %622, %625 : vector<8x8xf32>
    %c127 = arith.constant 127 : index
    %627 = memref.load %arg1[%c127] : memref<144xf32, #tpu.memory_space<smem>>
    %628 = vector.broadcast %627 : f32 to vector<8x8xf32>
    %629 = arith.mulf %628, %39 : vector<8x8xf32>
    %630 = arith.addf %626, %629 : vector<8x8xf32>
    %c128 = arith.constant 128 : index
    %631 = memref.load %arg1[%c128] : memref<144xf32, #tpu.memory_space<smem>>
    %632 = vector.broadcast %631 : f32 to vector<8x8xf32>
    %633 = arith.mulf %632, %41 : vector<8x8xf32>
    %634 = arith.addf %630, %633 : vector<8x8xf32>
    %c129 = arith.constant 129 : index
    %635 = memref.load %arg1[%c129] : memref<144xf32, #tpu.memory_space<smem>>
    %636 = vector.broadcast %635 : f32 to vector<8x8xf32>
    %637 = arith.mulf %636, %43 : vector<8x8xf32>
    %638 = arith.addf %634, %637 : vector<8x8xf32>
    %c130 = arith.constant 130 : index
    %639 = memref.load %arg1[%c130] : memref<144xf32, #tpu.memory_space<smem>>
    %640 = vector.broadcast %639 : f32 to vector<8x8xf32>
    %641 = arith.mulf %640, %45 : vector<8x8xf32>
    %642 = arith.addf %638, %641 : vector<8x8xf32>
    %c131 = arith.constant 131 : index
    %643 = memref.load %arg1[%c131] : memref<144xf32, #tpu.memory_space<smem>>
    %644 = vector.broadcast %643 : f32 to vector<8x8xf32>
    %645 = arith.mulf %644, %47 : vector<8x8xf32>
    %646 = arith.addf %642, %645 : vector<8x8xf32>
    %c132 = arith.constant 132 : index
    %647 = memref.load %arg1[%c132] : memref<144xf32, #tpu.memory_space<smem>>
    %648 = vector.broadcast %647 : f32 to vector<8x8xf32>
    %649 = arith.mulf %648, %49 : vector<8x8xf32>
    %650 = arith.addf %646, %649 : vector<8x8xf32>
    %c133 = arith.constant 133 : index
    %651 = memref.load %arg1[%c133] : memref<144xf32, #tpu.memory_space<smem>>
    %652 = vector.broadcast %651 : f32 to vector<8x8xf32>
    %653 = arith.mulf %652, %51 : vector<8x8xf32>
    %654 = arith.addf %650, %653 : vector<8x8xf32>
    %c134 = arith.constant 134 : index
    %655 = memref.load %arg1[%c134] : memref<144xf32, #tpu.memory_space<smem>>
    %656 = vector.broadcast %655 : f32 to vector<8x8xf32>
    %657 = arith.mulf %656, %53 : vector<8x8xf32>
    %658 = arith.addf %654, %657 : vector<8x8xf32>
    %c135 = arith.constant 135 : index
    %659 = memref.load %arg1[%c135] : memref<144xf32, #tpu.memory_space<smem>>
    %660 = vector.broadcast %659 : f32 to vector<8x8xf32>
    %661 = arith.mulf %660, %55 : vector<8x8xf32>
    %662 = arith.addf %658, %661 : vector<8x8xf32>
    %c136 = arith.constant 136 : index
    %663 = memref.load %arg1[%c136] : memref<144xf32, #tpu.memory_space<smem>>
    %664 = vector.broadcast %663 : f32 to vector<8x8xf32>
    %665 = arith.mulf %664, %57 : vector<8x8xf32>
    %666 = arith.addf %662, %665 : vector<8x8xf32>
    %c137 = arith.constant 137 : index
    %667 = memref.load %arg1[%c137] : memref<144xf32, #tpu.memory_space<smem>>
    %668 = vector.broadcast %667 : f32 to vector<8x8xf32>
    %669 = arith.mulf %668, %59 : vector<8x8xf32>
    %670 = arith.addf %666, %669 : vector<8x8xf32>
    %c138 = arith.constant 138 : index
    %671 = memref.load %arg1[%c138] : memref<144xf32, #tpu.memory_space<smem>>
    %672 = vector.broadcast %671 : f32 to vector<8x8xf32>
    %673 = arith.mulf %672, %61 : vector<8x8xf32>
    %674 = arith.addf %670, %673 : vector<8x8xf32>
    %c139 = arith.constant 139 : index
    %675 = memref.load %arg1[%c139] : memref<144xf32, #tpu.memory_space<smem>>
    %676 = vector.broadcast %675 : f32 to vector<8x8xf32>
    %677 = arith.mulf %676, %63 : vector<8x8xf32>
    %678 = arith.addf %674, %677 : vector<8x8xf32>
    %c140 = arith.constant 140 : index
    %679 = memref.load %arg1[%c140] : memref<144xf32, #tpu.memory_space<smem>>
    %680 = vector.broadcast %679 : f32 to vector<8x8xf32>
    %681 = arith.mulf %680, %65 : vector<8x8xf32>
    %682 = arith.addf %678, %681 : vector<8x8xf32>
    %c141 = arith.constant 141 : index
    %683 = memref.load %arg1[%c141] : memref<144xf32, #tpu.memory_space<smem>>
    %684 = vector.broadcast %683 : f32 to vector<8x8xf32>
    %685 = arith.mulf %684, %67 : vector<8x8xf32>
    %686 = arith.addf %682, %685 : vector<8x8xf32>
    %c142 = arith.constant 142 : index
    %687 = memref.load %arg1[%c142] : memref<144xf32, #tpu.memory_space<smem>>
    %688 = vector.broadcast %687 : f32 to vector<8x8xf32>
    %689 = arith.mulf %688, %69 : vector<8x8xf32>
    %690 = arith.addf %686, %689 : vector<8x8xf32>
    %c143 = arith.constant 143 : index
    %691 = memref.load %arg1[%c143] : memref<144xf32, #tpu.memory_space<smem>>
    %692 = vector.broadcast %691 : f32 to vector<8x8xf32>
    %693 = arith.mulf %692, %71 : vector<8x8xf32>
    %694 = arith.addf %690, %693 : vector<8x8xf32>
    %c3_169 = arith.constant 3 : index
    %695 = memref.load %arg2[%c3_169] : memref<4xf32, #tpu.memory_space<smem>>
    %696 = vector.broadcast %695 : f32 to vector<8x8xf32>
    %697 = arith.mulf %694, %696 : vector<8x8xf32>
    %c3_170 = arith.constant 3 : index
    %698 = memref.load %arg3[%c3_170] : memref<4xf32, #tpu.memory_space<smem>>
    %699 = vector.broadcast %698 : f32 to vector<8x8xf32>
    %700 = arith.addf %697, %699 : vector<8x8xf32>
    %cst_171 = arith.constant 0.000000e+00 : f32
    %701 = vector.broadcast %cst_171 : f32 to vector<8x8xf32>
    %702 = arith.cmpf oge, %700, %701 : vector<8x8xf32>
    %703 = vector.broadcast %72 : f32 to vector<8x8xf32>
    %704 = arith.mulf %703, %700 : vector<8x8xf32>
    %705 = arith.select %702, %700, %704 : vector<8x8xi1>, vector<8x8xf32>
    %c0_172 = arith.constant 0 : index
    %c3_173 = arith.constant 3 : index
    %c0_174 = arith.constant 0 : index
    %c0_175 = arith.constant 0 : index
    %706 = vector.load %arg9[%c0_172, %c3_173, %c0_174, %c0_175] : memref<1x4x8x8xf32, #tpu.memory_space<vmem>>, vector<1x1x8x8xf32>
    %707 = vector.shape_cast %706 : vector<1x1x8x8xf32> to vector<8x8xf32>
    %708 = vector.shape_cast %705 : vector<8x8xf32> to vector<1x1x8x8xf32>
    tpu.vector_store %arg9[%c0_172, %c3_173, %c0_174, %c0_175], %708 {strides = array<i32>} : memref<1x4x8x8xf32, #tpu.memory_space<vmem>>, vector<1x1x8x8xf32>,
    return
  }
  func.func @transform_0(%arg0: i32) -> i32 {
    %c0_i32 = arith.constant 0 : i32
    %c0_i32_0 = arith.constant 0 : i32
    return %c0_i32 : i32
  }
  func.func @transform_1(%arg0: i32) -> i32 {
    %c0_i32 = arith.constant 0 : i32
    %c0_i32_0 = arith.constant 0 : i32
    return %c0_i32 : i32
  }
  func.func @transform_2(%arg0: i32) -> i32 {
    %c0_i32 = arith.constant 0 : i32
    %c0_i32_0 = arith.constant 0 : i32
    return %c0_i32 : i32
  }
  func.func @transform_3(%arg0: i32) -> i32 {
    %c0_i32 = arith.constant 0 : i32
    %c0_i32_0 = arith.constant 0 : i32
    return %c0_i32 : i32
  }
  func.func @transform_4(%arg0: i32) -> (i32, i32, i32, i32) {
    %c0_i32 = arith.constant 0 : i32
    %c0_i32_0 = arith.constant 0 : i32
    %c0_i32_1 = arith.constant 0 : i32
    %c0_i32_2 = arith.constant 0 : i32
    return %arg0, %c0_i32, %c0_i32_0, %c0_i32_1 : i32, i32, i32, i32
  }
  func.func @transform_5(%arg0: i32) -> (i32, i32, i32, i32) {
    %c0_i32 = arith.constant 0 : i32
    %c0_i32_0 = arith.constant 0 : i32
    %c0_i32_1 = arith.constant 0 : i32
    %c0_i32_2 = arith.constant 0 : i32
    return %arg0, %c0_i32, %c0_i32_0, %c0_i32_1 : i32, i32, i32, i32
  }
  func.func @transform_6(%arg0: i32) -> (i32, i32, i32, i32) {
    %c0_i32 = arith.constant 0 : i32
    %c0_i32_0 = arith.constant 0 : i32
    %c0_i32_1 = arith.constant 0 : i32
    %c0_i32_2 = arith.constant 0 : i32
    return %arg0, %c0_i32, %c0_i32_0, %c0_i32_1 : i32, i32, i32, i32
  }
  func.func @transform_7(%arg0: i32) -> (i32, i32, i32, i32) {
    %c0_i32 = arith.constant 0 : i32
    %c0_i32_0 = arith.constant 0 : i32
    %c0_i32_1 = arith.constant 0 : i32
    %c0_i32_2 = arith.constant 0 : i32
    return %arg0, %c0_i32, %c0_i32_0, %c0_i32_1 : i32, i32, i32, i32
  }
  func.func @transform_8(%arg0: i32) -> (i32, i32, i32, i32) {
    %c0_i32 = arith.constant 0 : i32
    %c0_i32_0 = arith.constant 0 : i32
    %c0_i32_1 = arith.constant 0 : i32
    %c0_i32_2 = arith.constant 0 : i32
    return %arg0, %c0_i32, %c0_i32_0, %c0_i32_1 : i32, i32, i32, i32
  }
}

</mosaic_0001>

<bundles_post_ra>
// kernel: tpu_custom_call.1
= control target key start
LH: loop header
LB: loop body
LE: loop exit
PB: predicated region body
PF: predicated region fallthrough
CT: control target
= control target key end

     0   :  { %s2604_s0 = inlined_call_operand.vmem [shape: f32[144], index: 0, kind: input, shape index: {}]   ;;  %s2605_s1 = inlined_call_operand.vmem [shape: f32[4], index: 1, kind: input, shape index: {}]   ;;  %s2606_s2 = inlined_call_operand.vmem [shape: f32[4], index: 2, kind: input, shape index: {}]   ;;  %s2607_s3 = inlined_call_operand.<no memory space> [shape: f32[1], index: 3, kind: input, shape index: {}]   ;;  %s2608_s4 = inlined_call_operand.vmem [shape: f32[2,4,9,9], index: 4, kind: input, shape index: {}]   ;;  %s2609_s5 = inlined_call_operand.vmem [shape: f32[2,4,9,8], index: 5, kind: input, shape index: {}]   ;;  %s2610_s6 = inlined_call_operand.vmem [shape: f32[2,4,8,9], index: 6, kind: input, shape index: {}]   ;;  %s2611_s7 = inlined_call_operand.vmem [shape: f32[2,4,8,8], index: 7, kind: input, shape index: {}]   ;;  %s2612_s8 = inlined_call_operand.hbm [shape: f32[2,4,8,8], index: 8, kind: output, shape index: {}]  }
   0x1   :  { %2615 = sst [smem:[#allocation13_spill]] %s2604_s0 }
   0x2   :  { %2616 = sst [smem:[#allocation14_spill]] %s2605_s1 }
   0x3   :  { %2617 = sst [smem:[#allocation15_spill]] %s2606_s2 }
   0x4   :  { %2618 = sst [smem:[#allocation16_spill]] %s2608_s4 }
   0x5   :  { %13 = sst [smem:[#allocation2]] %s2607_s3 }
   0x6   :  { %14 = vsyncpa [#allocation5], 0 }
   0x7   :  { %15 = vsyncpa [#allocation7], 0 }
   0x8   :  { %16 = vsyncpa [#allocation4], 0 }
   0x9   :  { %18 = vsyncpa [#allocation4 + $0x1], 0  ;;  %s1845_s29 = smov 0   ;;  %s1847_s30 = smov 0  }
   0xa   :  { %s1849_s9 = smov 0   ;;  %s1851_s10 = smov 0  }
   0xb LB: > { %s1866_s3 = sadd.s32 4294967295, %s1789_s10   ;;  %s1399_s11 = sadd.s32 4294967294, %s1789_s10   ;;  %s1789_s10 = sphi %s1851_s10, %s2631_s10   ;;  %s1785_s9 = sphi %s1849_s9, %s2630_s9   ;;  %s1781_s30 = sphi %s1847_s30, %s2629_s30   ;;  %s1777_s29 = sphi %s1845_s29, %s2628_s29  }
   0xc   : > { %s1870_s12 = sadd.s32 1, %s1789_s10   ;;  %s219_s13 = sadd.s32 1, %s1785_s9 }
   0xd   : > { %s216_s14 = ssub.s32 %s1789_s10, %s1870_s12  ;;  %p229_p0 = scmp.ne.s32.totalorder %s1785_s9, %s1781_s30 }
   0xe   : > { %p217_p1 = scmp.eq.s32.totalorder %s216_s14, 0  ;;  %p230_p2 = scmp.eq.s32.totalorder %s1866_s3, 1 }
   0xf   : > { %p235_p3 = scmp.ne.s32.totalorder %s1781_s30, %s1777_s29  ;;  %p236_p4 = scmp.eq.s32.totalorder %s1399_s11, 1 }
  0x10   : > { %s1881_s15 = scalar_select %p217_p1, %s1785_s9, %s219_s13  }
  0x11   : > { %p1883_p5 = por %p230_p2, %p229_p0  ;;  %p1887_p6 = por %p236_p4, %p235_p3 }
  0x12   : > { %p1400_p7 = scmp.ge.s32.totalorder %s1789_s10, 1  ;;  %p243_p8 = scmp.lt.s32.totalorder %s1789_s10, 3 }
  0x13   : > { %p1626_p9 = scmp.eq.s32.totalorder %s1866_s3, 0  ;;  %s2622_s1 = sld [smem:[#allocation14_spill]] }
  0x14   : > { %p1894_p10 = pnand %p1400_p7, %p243_p8  ;;  %s2623_s0 = sld [smem:[#allocation13_spill]] }
  0x15   : > { %s2624_s2 = sld [smem:[#allocation15_spill]]  ;;  %s1791_s28 = smov [#allocation6]  }
  0x16   : > { %p1612_p11 = pneg %p1894_p10  ;;  %s1792_s11 = smov [#allocation3]  }
  0x17   : > { %s1793_s13 = smov [#allocation8]  }
  0x18   : > { %p1613_p12 = pnand %p1626_p9, %p1612_p11 }
  0x19   : > { %s265_s21 = sshll.u32 %s2622_s1, 4  ;;  %s266_s21 = int_to_ptr.vmem [resolvable:$true] %s265_s21 }
  0x1a   : > { %s255_s24 = sshll.u32 %s2623_s0, 4  ;;  %323 = sbr.rel (%p1894_p10) target bundleno = 298 (0x12a), region = 52  ;;  %s256_s24 = int_to_ptr.vmem [resolvable:$true] %s255_s24 }
  0x1b   : > { %s275_s27 = sshll.u32 %s2624_s2, 4  ;;  %s276_s27 = int_to_ptr.vmem [resolvable:$true] %s275_s27 }
  0x1c   : > { %1618 = dma.vmem_to_smem (!%p1613_p12), %s266_s21, 16, %s1791_s28, [#allocation7]  }
  0x1d   : > { %1615 = dma.vmem_to_smem (!%p1613_p12), %s256_s24, 32, %s1792_s11, [#allocation5]  }
  0x1e   : > { %1621 = dma.vmem_to_smem (!%p1613_p12), %s276_s27, 16, %s1793_s13, [#allocation7]  }
  0x1f   : > { %1764 = dma.done.wait (%p1626_p9), [#allocation5], 32  }
  0x20   : > { %1766 = vsyncadd (%p1626_p9), [#allocation5], 4294967264 }
  0x21   : > { %1768 = dma.done.wait (%p1626_p9), [#allocation7], 32  }
  0x22   : > { %1770 = vsyncadd (%p1626_p9), [#allocation7], 4294967264 }
  0x23   : > { %340 = sfence }
  0x24   : > { %p384_p13 = scmp.lt.s32.totalorder %s1866_s3, 1  ;;  %s1443_s14 = sld [smem:[#allocation3 + $0x8]]  ;;  %vm643_vm0 = vcmask 64512  }
  0x25   : > { %s1437_s18 = sld [smem:[#allocation3 + $0x2]]  ;;  %s1794_s23 = smov 127  }
  0x26   : > { %s1923_s19 = scalar_select %p384_p13, %s1866_s3, 1 }
  0x27   : > { %s2625_s4 = sld [smem:[#allocation16_spill]] }
  0x28   : > { %s2614_s20 = sshll.u32 %s1923_s19, 6  ;;  %s2613_s21 = sshll.u32 %s1923_s19, 5 }
  0x29   : > { %s1449_s25 = sld [smem:[#allocation3 + $0xe]]  ;;  %s1945_s28 = scalar_lea.vmem %s2610_s6, %s2613_s21 }
  0x2a   : > { %v482_v1 = vstv %s1443_s14  ;;  %s1446_s11 = sld [smem:[#allocation3 + $0xb]]  ;;  %v1951_v6 = vld [vmem:[%s1945_s28 + $0x8] sm:$0xff]  ;;  %v1959_v11 = vld [vmem:[%s1945_s28] sm:$0xff]  ;;  %v1970_v18 = vld [vmem:[%s1945_s28 + $0x10] sm:$0xff] }
  0x2b   : > { %s1440_s13 = sld [smem:[#allocation3 + $0x5]]  ;;  %v450_v4 = vstv %s1437_s18 }
  0x2c   : > { %s1452_s22 = sld [smem:[#allocation3 + $0x11]] }
  0x2d   : > { %s1932_s24 = scalar_lea.vmem %s2625_s4, %s2614_s20  ;;  %s1458_s14 = sld [smem:[#allocation3 + $0x17]] }
  0x2e   : > { %v1935_v0 = vld [vmem:[%s1932_s24 + $0x1] sm:$0xff]  ;;  %v1954_v7 = vld [vmem:[%s1932_s24 + $0x10] sm:$0xff]  ;;  %s1455_s18 = sld [smem:[#allocation3 + $0x14]] }
  0x2f   : > { %v1938_v2 = vld [vmem:[%s1932_s24] sm:$0xff]  ;;  %v483_v3 = vmul.f32 %v482_v1, %v1935_v0  ;;  %v514_v8 = vstv %s1449_s25  ;;  %v1965_v15 = vld [vmem:[%s1932_s24 + $0x11] sm:$0xff]  ;;  %s1461_s26 = sld [smem:[#allocation3 + $0x1a]] }
  0x30   : > { %v451_v5 = vmul.f32 %v450_v4, %v1938_v2  ;;  %v515_v9 = vmul.f32 %v1951_v6, %v514_v8  ;;  %v498_v10 = vstv %s1446_s11  ;;  %s1473_s25 = sld [smem:[#allocation3 + $0x26]]  ;;  %v1974_v20 = vld [vmem:[%s1932_s24 + $0x20] sm:$0xff]  ;;  %v1986_v28 = vld [vmem:[%s1932_s24 + $0x30] sm:$0xff] }
  0x31   : > { %485 = vrot.lane.b32.xlu1 %v483_v3, %s1794_s23  ;;  %v499_v12 = vmul.f32 %v1954_v7, %v498_v10  ;;  %v466_v13 = vstv %s1440_s13  ;;  %s1464_s27 = sld [smem:[#allocation3 + $0x1d]]  ;;  %v1980_v24 = vld [vmem:[%s1932_s24 + $0x21] sm:$0xff] }
  0x32   : > { %453 = vrot.lane.b32.xlu0 %v451_v5, %s1794_s23  ;;  %517 = vrot.lane.b32.xlu2 %v515_v9, %s1794_s23  ;;  %v467_v14 = vmul.f32 %v466_v13, %v1959_v11  ;;  %v530_v16 = vstv %s1452_s22  ;;  %s1512_s11 = sld [smem:[#allocation3 + $0x4a]] }
  0x33   : > { %v531_v17 = vmul.f32 %v1965_v15, %v530_v16  ;;  %v562_v19 = vstv %s1458_s14  ;;  %s1476_s13 = sld [smem:[#allocation3 + $0x29]] }
  0x34   : > { %v546_v21 = vstv %s1455_s18  ;;  %v563_v22 = vmul.f32 %v1970_v18, %v562_v19  ;;  %s1551_s22 = sld [smem:[#allocation3 + $0x6e]] }
  0x35   : > { %v547_v23 = vmul.f32 %v1974_v20, %v546_v21  ;;  %v578_v25 = vstv %s1461_s26  ;;  %s1515_s14 = sld [smem:[#allocation3 + $0x4d]] }
  0x36   : > { %v579_v26 = vmul.f32 %v1980_v24, %v578_v25  ;;  %v654_v27 = vstv %s1473_s25  ;;  %s1479_s18 = sld [smem:[#allocation3 + $0x2c]] }
  0x37   : > { %v594_v29 = vstv %s1464_s27  ;;  %v655_v30 = vmul.f32 %v654_v27, %v1938_v2  ;;  %s1554_s26 = sld [smem:[#allocation3 + $0x71]] }
  0x38   : > { %v595_v31 = vmul.f32 %v1986_v28, %v594_v29  ;;  %v857_v32 = vstv %s1512_s11  ;;  %s1518_s25 = sld [smem:[#allocation3 + $0x50]] }
  0x39   : > { %501 = vrot.lane.b32.xlu1 %v499_v12, %s1794_s23  ;;  %v858_v33 = vmul.f32 %v857_v32, %v1938_v2  ;;  %v670_v34 = vstv %s1476_s13  ;;  %s1482_s27 = sld [smem:[#allocation3 + $0x2f]] }
  0x3a   : > { %469 = vrot.lane.b32.xlu0 %v467_v14, %s1794_s23  ;;  %533 = vrot.lane.b32.xlu2 %v531_v17, %s1794_s23  ;;  %v1060_v35 = vstv %s1551_s22  ;;  %v671_v36 = vmul.f32 %v670_v34, %v1959_v11  ;;  %s1557_s11 = sld [smem:[#allocation3 + $0x74]] }
  0x3b   : > { %v1061_v37 = vmul.f32 %v1060_v35, %v1938_v2  ;;  %v873_v38 = vstv %s1515_s14  ;;  %s1521_s13 = sld [smem:[#allocation3 + $0x53]]  ;;  %v2050_v35 = vld [vmem:[%s1945_s28 + $0x18] sm:$0xff] }
  0x3c   : > { %v874_v39 = vmul.f32 %v873_v38, %v1959_v11  ;;  %v686_v40 = vstv %s1479_s18  ;;  %s1485_s22 = sld [smem:[#allocation3 + $0x32]] }
  0x3d   : > { %v1076_v41 = vstv %s1554_s26  ;;  %v687_v42 = vmul.f32 %v686_v40, %v1935_v0  ;;  %s1560_s14 = sld [smem:[#allocation3 + $0x77]] }
  0x3e   : > { %v1077_v43 = vmul.f32 %v1076_v41, %v1959_v11  ;;  %v889_v44 = vstv %s1518_s25  ;;  %s1524_s18 = sld [smem:[#allocation3 + $0x56]] }
  0x3f   : > { %v890_v45 = vmul.f32 %v889_v44, %v1935_v0  ;;  %v702_v46 = vstv %s1482_s27  ;;  %s1488_s26 = sld [smem:[#allocation3 + $0x35]] }
  0x40   : > { %v1092_v47 = vstv %s1557_s11  ;;  %v703_v48 = vmul.f32 %v1954_v7, %v702_v46  ;;  %s1563_s25 = sld [smem:[#allocation3 + $0x7a]] }
  0x41   : > { %565 = vrot.lane.b32.xlu1 %v563_v22, %s1794_s23  ;;  %v1093_v49 = vmul.f32 %v1092_v47, %v1935_v0  ;;  %v905_v50 = vstv %s1521_s13  ;;  %s1527_s27 = sld [smem:[#allocation3 + $0x59]] }
  0x42   : > { %549 = vrot.lane.b32.xlu0 %v547_v23, %s1794_s23  ;;  %581 = vrot.lane.b32.xlu2 %v579_v26, %s1794_s23  ;;  %v906_v51 = vmul.f32 %v1954_v7, %v905_v50  ;;  %v718_v52 = vstv %s1485_s22  ;;  %s1491_s11 = sld [smem:[#allocation3 + $0x38]] }
  0x43   : > { %v1108_v53 = vstv %s1560_s14  ;;  %v719_v54 = vmul.f32 %v1951_v6, %v718_v52  ;;  %s1566_s13 = sld [smem:[#allocation3 + $0x7d]] }
  0x44   : > { %v1109_v55 = vmul.f32 %v1954_v7, %v1108_v53  ;;  %v921_v56 = vstv %s1524_s18  ;;  %s1530_s22 = sld [smem:[#allocation3 + $0x5c]] }
  0x45   : > { %v922_v57 = vmul.f32 %v1951_v6, %v921_v56  ;;  %v734_v58 = vstv %s1488_s26  ;;  %s1494_s14 = sld [smem:[#allocation3 + $0x3b]] }
  0x46   : > { %v1124_v59 = vstv %s1563_s25  ;;  %v735_v60 = vmul.f32 %v1965_v15, %v734_v58  ;;  %s1569_s18 = sld [smem:[#allocation3 + $0x80]] }
  0x47   : > { %v1125_v61 = vmul.f32 %v1951_v6, %v1124_v59  ;;  %v937_v62 = vstv %s1527_s27  ;;  %s1533_s26 = sld [smem:[#allocation3 + $0x5f]]  ;;  %v2106_v59 = vld [vmem:[%s1932_s24 + $0x31] sm:$0xff] }
  0x48   : > { %v938_v63 = vmul.f32 %v1965_v15, %v937_v62  ;;  %v750_v1 = vstv %s1491_s11  ;;  %s1497_s25 = sld [smem:[#allocation3 + $0x3e]] }
  0x49   : > { %657 = vrot.lane.b32.xlu1 %v655_v30, %s1794_s23  ;;  %v1140_v3 = vstv %s1566_s13  ;;  %v751_v4 = vmul.f32 %v1974_v20, %v750_v1  ;;  %s1572_s27 = sld [smem:[#allocation3 + $0x83]] }
  0x4a   : > { %597 = vrot.lane.b32.xlu0 %v595_v31, %s1794_s23  ;;  %860 = vrot.lane.b32.xlu2 %v858_v33, %s1794_s23  ;;  %v1141_v5 = vmul.f32 %v1965_v15, %v1140_v3  ;;  %v953_v8 = vstv %s1530_s22  ;;  %s1536_s11 = sld [smem:[#allocation3 + $0x62]] }
  0x4b   : > { %v954_v9 = vmul.f32 %v1974_v20, %v953_v8  ;;  %v766_v10 = vstv %s1494_s14  ;;  %s1500_s13 = sld [smem:[#allocation3 + $0x41]] }
  0x4c   : > { %v1156_v12 = vstv %s1569_s18  ;;  %v767_v13 = vmul.f32 %v1970_v18, %v766_v10  ;;  %s1575_s22 = sld [smem:[#allocation3 + $0x86]] }
  0x4d   : > { %v1157_v14 = vmul.f32 %v1974_v20, %v1156_v12  ;;  %v969_v16 = vstv %s1533_s26  ;;  %s1539_s14 = sld [smem:[#allocation3 + $0x65]] }
  0x4e   : > { %v970_v17 = vmul.f32 %v1970_v18, %v969_v16  ;;  %v782_v19 = vstv %s1497_s25  ;;  %s1467_s18 = sld [smem:[#allocation3 + $0x20]] }
  0x4f   : > { %v1172_v21 = vstv %s1572_s27  ;;  %v783_v22 = vmul.f32 %v1980_v24, %v782_v19  ;;  %s1578_s26 = sld [smem:[#allocation3 + $0x89]] }
  0x50   : > { %v1173_v23 = vmul.f32 %v1970_v18, %v1172_v21  ;;  %v985_v25 = vstv %s1536_s11  ;;  %s1503_s25 = sld [smem:[#allocation3 + $0x44]] }
  0x51   : > { %673 = vrot.lane.b32.xlu1 %v671_v36, %s1794_s23  ;;  %v986_v26 = vmul.f32 %v1980_v24, %v985_v25  ;;  %v798_v27 = vstv %s1500_s13  ;;  %s1581_s27 = sld [smem:[#allocation3 + $0x8c]] }
  0x52   : > { %1063 = vrot.lane.b32.xlu0 %v1061_v37, %s1794_s23  ;;  %876 = vrot.lane.b32.xlu2 %v874_v39, %s1794_s23  ;;  %v1188_v29 = vstv %s1575_s22  ;;  %v799_v30 = vmul.f32 %v1986_v28, %v798_v27  ;;  %s441_s11 = sld [smem:[#allocation3]] }
  0x53   : > { %v1189_v31 = vmul.f32 %v1980_v24, %v1188_v29  ;;  %v1001_v32 = vstv %s1539_s14  ;;  %s1436_s13 = sld [smem:[#allocation3 + $0x1]] }
  0x54   : > { %v1002_v34 = vmul.f32 %v1986_v28, %v1001_v32  ;;  %v610_v36 = vstv %s1467_s18  ;;  %s1542_s22 = sld [smem:[#allocation3 + $0x68]]  ;;  %s2626_s18 = sshll.u32 %s1923_s19, 6 }
  0x55   : > { %v1204_v37 = vstv %s1578_s26  ;;  %v611_v38 = vmul.f32 %v2050_v35, %v610_v36  ;;  %s2054_s14 = sld [smem:[#allocation3 + $0x48]]  ;;  %s2069_s26 = scalar_lea.vmem %s2609_s5, %s2626_s18 }
  0x56   : > { %s2057_s21 = sld [smem:[#allocation3 + $0x49]]  ;;  %v1205_v39 = vmul.f32 %v1986_v28, %v1204_v37  ;;  %v814_v40 = vstv %s1503_s25  ;;  %v2079_v44 = vld [vmem:[%s2069_s26] sm:$0xff] }
  0x57   : > { %s2060_s20 = sld [smem:[#allocation3 + $0x23]]  ;;  %v2156_v32 = vld [vmem:[%s2069_s26 + $0x1] sm:$0xff] }
  0x58   : > { %s2072_s2 = sld [smem:[#allocation3 + $0x3]] }
  0x59   : > { %689 = vrot.lane.b32.xlu1 %v687_v42, %s1794_s23  ;;  %v1220_v42 = vstv %s1581_s27  ;;  %s2074_s4 = sld [smem:[#allocation3 + $0x6b]]  ;;  %v446_v46 = vstv %s1436_s13 }
  0x5a   : > { %1079 = vrot.lane.b32.xlu0 %v1077_v43, %s1794_s23  ;;  %892 = vrot.lane.b32.xlu2 %v890_v45, %s1794_s23  ;;  %v815_v43 = vmul.f32 %v2050_v35, %v814_v40  ;;  %v442_v45 = vstv %s441_s11  ;;  %s2081_s0 = sld [smem:[#allocation3 + $0x4b]]  ;;  %v1017_v47 = vstv %s1542_s22 }
  0x5b   : > { %s2083_s1 = sld [smem:[#allocation3 + $0x47]]  ;;  %v443_v50 = vmul.f32 %v442_v45, %v1938_v2  ;;  %v1018_v53 = vmul.f32 %v2050_v35, %v1017_v47 }
  0x5c   : > { %s2086_s25 = sld [smem:[#allocation3 + $0x4]]  ;;  %v853_v52 = vstv %s2057_s21 }
  0x5d   : > { %s2093_s27 = sld [smem:[#allocation3 + $0x4c]] }
  0x5e   : > { %s2097_s11 = sld [smem:[#allocation3 + $0x8f]]  ;;  %v458_v56 = vstv %s2072_s2 }
  0x5f   : > { %s2108_s21 = sld [smem:[#allocation3 + $0x6]]  ;;  %v459_v1 = vmul.f32 %v458_v56, %v1959_v11 }
  0x60   : > { %s2122_s2 = sld [smem:[#allocation3 + $0x7]]  ;;  %v865_v3 = vstv %s2081_s0 }
  0x61   : > { %705 = vrot.lane.b32.xlu1 %v703_v48, %s1794_s23  ;;  %v1221_v48 = vmul.f32 %v2050_v35, %v1220_v42  ;;  %s2138_s18 = sld [smem:[#allocation3 + $0x4f]]  ;;  %v866_v16 = vmul.f32 %v865_v3, %v1959_v11 }
  0x62   : > { %1095 = vrot.lane.b32.xlu0 %v1093_v49, %s1794_s23  ;;  %908 = vrot.lane.b32.xlu2 %v906_v51, %s1794_s23  ;;  %v447_v49 = vmul.f32 %v446_v46, %v2079_v44  ;;  %v849_v51 = vstv %s2054_s14  ;;  %v462_v12 = vstv %s2086_s25  ;;  %s2142_s0 = sld [smem:[#allocation3 + $0xa]] }
  0x63   : > { %v850_v58 = vmul.f32 %v849_v51, %v1938_v2  ;;  %s2151_s25 = sld [smem:[#allocation3 + $0x25]] }
  0x64   : > { %v1236_v19 = vstv %s2097_s11  ;;  %s2163_s11 = sld [smem:[#allocation3 + $0x51]] }
  0x65   : > { %v1237_v29 = vmul.f32 %v2106_v59, %v1236_v19  ;;  %s2174_s13 = sld [smem:[#allocation3 + $0x27]] }
  0x66   : > { %s2180_s22 = sld [smem:[#allocation3 + $0x52]] }
  0x67   : > { %v885_v45 = vstv %s2138_s18  ;;  %s2202_s18 = sld [smem:[#allocation3 + $0x12]] }
  0x69   : > { %721 = vrot.lane.b32.xlu1 %v719_v54, %s1794_s23  ;;  %v626_v54 = vstv %s2060_s20  ;;  %s2627_s20 = sshll.u32 %s1923_s19, 5  ;;  %s2134_s19 = sld [smem:[#allocation3 + $0x9]]  ;;  %v650_v56 = vstv %s2151_s25 }
  0x6a   : > { %1111 = vrot.lane.b32.xlu0 %v1109_v55, %s1794_s23  ;;  %924 = vrot.lane.b32.xlu2 %v922_v57, %s1794_s23  ;;  %v854_v57 = vmul.f32 %v853_v52, %v2079_v44  ;;  %s2116_s14 = scalar_lea.vmem %s2611_s7, %s2627_s20  ;;  %v627_v62 = vmul.f32 %v2106_v59, %v626_v54  ;;  %s2168_s20 = sld [smem:[#allocation3 + $0xf]]  ;;  %v897_v3 = vstv %s2163_s11 }
  0x6b   : > { %v2131_v10 = vld [vmem:[%s2116_s14] sm:$0xff]  ;;  %s2218_s25 = sld [smem:[#allocation3 + $0x54]] }
  0x6c   : > { %v855_v8 = vadd.f32 %v854_v57, %v850_v58  ;;  %s2224_s11 = sld [smem:[#allocation3 + $0x15]] }
  0x6f   : > { %v490_v46 = vstv %s2134_s19  ;;  %s2196_s19 = sld [smem:[#allocation3 + $0x10]] }
  0x70   : > { %v491_v57 = vmul.f32 %v1954_v7, %v490_v46 }
  0x71   : > { %737 = vrot.lane.b32.xlu1 %v735_v60, %s1794_s23  ;;  %v448_v60 = vadd.f32 %v447_v49, %v443_v50  ;;  %v494_v49 = vstv %s2142_s0  ;;  %s2210_s0 = sld [smem:[#allocation3 + $0x13]] }
  0x72   : > { %1127 = vrot.lane.b32.xlu0 %v1125_v61, %s1794_s23  ;;  %940 = vrot.lane.b32.xlu2 %v938_v63, %s1794_s23  ;;  %v1033_v61 = vstv %s2074_s4  ;;  %s2127_s4 = sld [smem:[#allocation3 + $0x4e]] }
  0x79   : > { %753 = vrot.lane.b32.xlu1 %v751_v4, %s1794_s23  ;;  %v830_v4 = vstv %s2083_s1  ;;  %s2146_s1 = sld [smem:[#allocation3 + $0x24]] }
  0x7a   : > { %1143 = vrot.lane.b32.xlu0 %v1141_v5, %s1794_s23  ;;  %956 = vrot.lane.b32.xlu2 %v954_v9, %s1794_s23  ;;  %v1034_v9 = vmul.f32 %v2106_v59, %v1033_v61 }
  0x7f   : > { %v646_v54 = vstv %s2146_s1  ;;  %s2214_s1 = sld [smem:[#allocation3 + $0x2a]] }
  0x81   : > { %769 = vrot.lane.b32.xlu1 %v767_v13, %s1794_s23 }
  0x82   : > { %1159 = vrot.lane.b32.xlu0 %v1157_v14, %s1794_s23  ;;  %972 = vrot.lane.b32.xlu2 %v970_v17, %s1794_s23  ;;  %v869_v14 = vstv %s2093_s27  ;;  %v831_v17 = vmul.f32 %v2106_v59, %v830_v4  ;;  %s2159_s27 = sld [smem:[#allocation3 + $0xc]]  ;;  %v651_v4 = vmul.f32 %v650_v56, %v2079_v44 }
  0x83   : > { %v870_v27 = vmul.f32 %v869_v14, %v2131_v10  ;;  %v2207_v14 = vld [vmem:[%s2116_s14 + $0x8] sm:$0xff] }
  0x89   : > { %785 = vrot.lane.b32.xlu1 %v783_v22, %s1794_s23 }
  0x8a   : > { %1175 = vrot.lane.b32.xlu0 %v1173_v23, %s1794_s23  ;;  %988 = vrot.lane.b32.xlu2 %v986_v26, %s1794_s23  ;;  %v463_v23 = vmul.f32 %v462_v12, %v2131_v10  ;;  %v474_v26 = vstv %s2108_s21  ;;  %s2165_s21 = sld [smem:[#allocation3 + $0xd]] }
  0x8b   : > { %v475_v36 = vmul.f32 %v474_v26, %v1935_v0 }
  0x8c   : > { %v2045_v33 = vpop.permute.xlu2 %517 }
  0x91   : > { %801 = vrot.lane.b32.xlu1 %v799_v30, %s1794_s23 }
  0x92   : > { %1191 = vrot.lane.b32.xlu0 %v1189_v31, %s1794_s23  ;;  %1004 = vrot.lane.b32.xlu2 %v1002_v34, %s1794_s23  ;;  %v478_v34 = vstv %s2122_s2  ;;  %s2188_s2 = sld [smem:[#allocation3 + $0x6c]] }
  0x93   : > { %v479_v42 = vmul.f32 %v478_v34, %v2156_v32 }
  0x94   : > { %v2062_v41 = vpop.permute.xlu2 %533 }
  0x99   : > { %613 = vrot.lane.b32.xlu1 %v611_v38, %s1794_s23  ;;  %v881_v38 = vstv %s2127_s4  ;;  %s2193_s4 = sld [smem:[#allocation3 + $0x6d]] }
  0x9a   : > { %1207 = vrot.lane.b32.xlu0 %v1205_v39, %s1794_s23  ;;  %817 = vrot.lane.b32.xlu2 %v815_v43, %s1794_s23  ;;  %v882_v47 = vmul.f32 %v881_v38, %v1935_v0 }
  0x9c   : > { %v2099_v55 = vpop.permute.xlu2 %581 }
  0xa1   : > { %1223 = vrot.lane.b32.xlu1 %v1221_v48, %s1794_s23  ;;  %v2177_v48 = vld [vmem:[%s2069_s26 + $0x10] sm:$0xff] }
  0xa2   : > { %1020 = vrot.lane.b32.xlu0 %v1018_v53, %s1794_s23  ;;  %629 = vrot.lane.b32.xlu2 %v627_v62, %s1794_s23  ;;  %v886_v53 = vmul.f32 %v885_v45, %v2156_v32 }
  0xa3   : > { %v2120_v63 = vpop.permute.xlu1 %485 }
  0xa4   : > { %v454_v5 = vpop.permute.xlu0 %453  ;;  %v861_v22 = vpop.permute.xlu2 %860 }
  0xa5   : > { %v456_v13 = vadd.f32 %v454_v5, %v448_v60  ;;  %v863_v25 = vadd.f32 %v861_v22, %v855_v8  ;;  %v495_v60 = vmul.f32 %v2177_v48, %v494_v49  ;;  %v647_v5 = vmul.f32 %v646_v54, %v1938_v2 }
  0xa6   : > { %v506_v8 = vstv %s2159_s27  ;;  %s2221_s27 = sld [smem:[#allocation3 + $0x6f]] }
  0xa7   : > { %v460_v21 = vadd.f32 %v459_v1, %v456_v13  ;;  %v867_v30 = vadd.f32 %v866_v16, %v863_v25  ;;  %v510_v16 = vstv %s2165_s21  ;;  %v507_v19 = vmul.f32 %v1951_v6, %v506_v8  ;;  %s2231_s21 = sld [smem:[#allocation3 + $0x2b]] }
  0xa8   : > { %v901_v25 = vstv %s2180_s22  ;;  %v511_v26 = vmul.f32 %v2207_v14, %v510_v16  ;;  %s2245_s22 = sld [smem:[#allocation3 + $0x16]] }
  0xa9   : > { %1036 = vrot.lane.b32.xlu1 %v1034_v9, %s1794_s23  ;;  %v464_v37 = vadd.f32 %v463_v23, %v460_v21  ;;  %v871_v40 = vadd.f32 %v870_v27, %v867_v30  ;;  %v652_v23 = vadd.f32 %v651_v4, %v647_v5  ;;  %v522_v30 = vstv %s2168_s20  ;;  %s2243_s20 = sld [smem:[#allocation3 + $0x70]] }
  0xaa   : > { %833 = vrot.lane.b32.xlu0 %v831_v17, %s1794_s23  ;;  %1239 = vrot.lane.b32.xlu2 %v1237_v29, %s1794_s23  ;;  %s2185_s23 = sld [smem:[#allocation3 + $0x28]]  ;;  %v662_v17 = vstv %s2174_s13  ;;  %v523_v46 = vmul.f32 %v1965_v15, %v522_v30  ;;  %v542_v4 = vstv %s2210_s0 }
  0xab   : > { %v502_v31 = vpop.permute.xlu1 %501  ;;  %v663_v34 = vmul.f32 %v662_v17, %v1959_v11  ;;  %s2233_s13 = sld [smem:[#allocation3 + $0x55]] }
  0xac   : > { %v470_v39 = vpop.permute.xlu0 %469  ;;  %v877_v51 = vpop.permute.xlu2 %876  ;;  %s2275_s0 = sld [smem:[#allocation3 + $0x57]] }
  0xad   : > { %v472_v43 = vadd.f32 %v470_v39, %v464_v37  ;;  %v879_v52 = vadd.f32 %v877_v51, %v871_v40  ;;  %v902_v39 = vmul.f32 %v2177_v48, %v901_v25  ;;  %v1052_v40 = vstv %s2188_s2  ;;  %s2256_s2 = sld [smem:[#allocation3 + $0x72]] }
  0xaf   : > { %v476_v50 = vadd.f32 %v475_v36, %v472_v43  ;;  %v883_v61 = vadd.f32 %v882_v47, %v879_v52  ;;  %v526_v47 = vstv %s2196_s19  ;;  %s2266_s19 = sld [smem:[#allocation3 + $0x2e]]  ;;  %v1072_v30 = vstv %s2243_s20 }
  0xb0   : > { %v666_v36 = vstv %s2185_s23  ;;  %s2250_s23 = sld [smem:[#allocation3 + $0x2d]] }
  0xb1   : > { %v480_v58 = vadd.f32 %v479_v42, %v476_v50  ;;  %v887_v12 = vadd.f32 %v886_v53, %v883_v61  ;;  %v1056_v42 = vstv %s2193_s4  ;;  %v667_v50 = vmul.f32 %v666_v36, %v2131_v10  ;;  %s2259_s4 = sld [smem:[#allocation3 + $0x18]] }
  0xb2   : > { %v1053_v53 = vmul.f32 %v1052_v40, %v1938_v2  ;;  %v1057_v54 = vmul.f32 %v1056_v42, %v2079_v44  ;;  %v1068_v2 = vstv %s2221_s27  ;;  %v2263_v44 = vld [vmem:[%s2069_s26 + $0x20] sm:$0xff]  ;;  %v917_v25 = vstv %s2233_s13  ;;  %s2289_s27 = sld [smem:[#allocation3 + $0x30]] }
  0xb3   : > { %v2191_v62 = vpop.permute.xlu1 %565  ;;  %v488_v1 = vadd.f32 %v2120_v63, %v480_v58  ;;  %v898_v63 = vmul.f32 %v1954_v7, %v897_v3  ;;  %v918_v40 = vmul.f32 %v2207_v14, %v917_v25  ;;  %s2301_s13 = sld [smem:[#allocation3 + $0x1c]] }
  0xb4   : > { %v2204_v9 = vpop.permute.xlu0 %549  ;;  %v893_v22 = vpop.permute.xlu2 %892  ;;  %s2308_s20 = sld [smem:[#allocation3 + $0x31]] }
  0xb5   : > { %v492_v13 = vadd.f32 %v491_v57, %v488_v1  ;;  %v895_v27 = vadd.f32 %v893_v22, %v887_v12  ;;  %v678_v57 = vstv %s2214_s1  ;;  %v913_v1 = vstv %s2218_s25  ;;  %s2280_s1 = sld [smem:[#allocation3 + $0x73]] }
  0xb6   : > { %v679_v8 = vmul.f32 %v678_v57, %v1935_v0  ;;  %v914_v16 = vmul.f32 %v1951_v6, %v913_v1  ;;  %s2283_s25 = sld [smem:[#allocation3 + $0x1b]]  ;;  %v694_v42 = vstv %s2250_s23 }
  0xb7   : > { %v496_v21 = vadd.f32 %v495_v60, %v492_v13  ;;  %v899_v37 = vadd.f32 %v898_v63, %v895_v27  ;;  %v538_v60 = vstv %s2202_s18  ;;  %v1058_v13 = vadd.f32 %v1057_v54, %v1053_v53  ;;  %s2269_s18 = sld [smem:[#allocation3 + $0x19]] }
  0xb8   : > { %v554_v27 = vstv %s2224_s11  ;;  %s2296_s11 = sld [smem:[#allocation3 + $0x58]]  ;;  %v695_v53 = vmul.f32 %v1954_v7, %v694_v42 }
  0xb9   : > { %v504_v29 = vadd.f32 %v502_v31, %v496_v21  ;;  %v2236_v31 = vld [vmem:[%s2069_s26 + $0x11] sm:$0xff]  ;;  %v903_v56 = vadd.f32 %v902_v39, %v899_v37  ;;  %s2316_s23 = sld [smem:[#allocation3 + $0x76]] }
  0xba   : > { %v527_v58 = vmul.f32 %v2236_v31, %v526_v47  ;;  %v1084_v47 = vstv %s2256_s2  ;;  %s2322_s2 = sld [smem:[#allocation3 + $0x5a]] }
  0xbb   : > { %v658_v38 = vpop.permute.xlu1 %657  ;;  %v508_v43 = vadd.f32 %v507_v19, %v504_v29  ;;  %v682_v19 = vstv %s2231_s21  ;;  %s2299_s21 = sld [smem:[#allocation3 + $0x75]] }
  0xbc   : > { %v660_v45 = vadd.f32 %v658_v38, %v652_v23  ;;  %v2240_v49 = vpop.permute.xlu0 %597  ;;  %v909_v3 = vpop.permute.xlu2 %908  ;;  %v1069_v23 = vmul.f32 %v1068_v2, %v1959_v11  ;;  %v683_v11 = vmul.f32 %v682_v19, %v2156_v32  ;;  %v558_v38 = vstv %s2245_s22  ;;  %s2311_s22 = sld [smem:[#allocation3 + $0x1e]] }
  0xbd   : > { %v512_v51 = vadd.f32 %v511_v26, %v508_v43  ;;  %v911_v63 = vadd.f32 %v909_v3, %v903_v56  ;;  %v543_v26 = vmul.f32 %v2263_v44, %v542_v4  ;;  %v2292_v43 = vld [vmem:[%s2116_s14 + $0x10] sm:$0xff]  ;;  %v698_v56 = vstv %s2266_s19  ;;  %s2331_s19 = sld [smem:[#allocation3 + $0x5b]] }
  0xbe   : > { %v664_v52 = vadd.f32 %v663_v34, %v660_v45  ;;  %v559_v57 = vmul.f32 %v2292_v43, %v558_v38  ;;  %v929_v3 = vstv %s2275_s0  ;;  %v933_v25 = vstv %s2296_s11  ;;  %s2340_s0 = sld [smem:[#allocation3 + $0x34]] }
  0xbf   : > { %v520_v61 = vadd.f32 %v2045_v33, %v512_v51  ;;  %v539_v33 = vmul.f32 %v1974_v20, %v538_v60  ;;  %v915_v39 = vadd.f32 %v914_v16, %v911_v63  ;;  %s2366_s11 = sld [smem:[#allocation3 + $0x7b]] }
  0xc0   : > { %v668_v12 = vadd.f32 %v667_v50, %v664_v52  ;;  %v555_v50 = vmul.f32 %v1970_v18, %v554_v27 }
  0xc1   : > { %v524_v5 = vadd.f32 %v523_v46, %v520_v61  ;;  %v1085_v61 = vmul.f32 %v1084_v47, %v1935_v0  ;;  %v574_v0 = vstv %s2269_s18  ;;  %s2335_s18 = sld [smem:[#allocation3 + $0x78]] }
  0xc3   : > { %v674_v17 = vpop.permute.xlu1 %673  ;;  %v528_v21 = vadd.f32 %v527_v58, %v524_v5  ;;  %v919_v58 = vadd.f32 %v918_v40, %v915_v39  ;;  %v714_v40 = vstv %s2308_s20  ;;  %s2383_s20 = sld [smem:[#allocation3 + $0x7c]] }
  0xc4   : > { %v676_v22 = vadd.f32 %v674_v17, %v668_v12  ;;  %v1064_v29 = vpop.permute.xlu0 %1063  ;;  %v925_v51 = vpop.permute.xlu2 %924  ;;  %v1088_v12 = vstv %s2280_s1  ;;  %v930_v17 = vmul.f32 %v1965_v15, %v929_v3  ;;  %s2345_s1 = sld [smem:[#allocation3 + $0x1f]] }
  0xc5   : > { %v536_v34 = vadd.f32 %v2062_v41, %v528_v21  ;;  %v1066_v37 = vadd.f32 %v1064_v29, %v1058_v13  ;;  %v1073_v41 = vmul.f32 %v1072_v30, %v2131_v10  ;;  %v570_v10 = vstv %s2259_s4  ;;  %s2327_s4 = sld [smem:[#allocation3 + $0x33]] }
  0xc6   : > { %v680_v36 = vadd.f32 %v679_v8, %v676_v22  ;;  %v699_v8 = vmul.f32 %v2177_v48, %v698_v56  ;;  %v571_v63 = vmul.f32 %v1980_v24, %v570_v10  ;;  %v927_v19 = vadd.f32 %v925_v51, %v919_v58 }
  0xc7   : > { %v540_v45 = vadd.f32 %v539_v33, %v536_v34  ;;  %v1070_v46 = vadd.f32 %v1069_v23, %v1066_v37  ;;  %v2319_v33 = vld [vmem:[%s2069_s26 + $0x21] sm:$0xff]  ;;  %v710_v21 = vstv %s2289_s27  ;;  %v1100_v29 = vstv %s2299_s21  ;;  %s2359_s27 = sld [smem:[#allocation3 + $0x36]] }
  0xc8   : > { %v684_v54 = vadd.f32 %v683_v11, %v680_v36  ;;  %v575_v27 = vmul.f32 %v2319_v33, %v574_v0  ;;  %v586_v30 = vstv %s2283_s25  ;;  %v711_v34 = vmul.f32 %v1951_v6, %v710_v21  ;;  %s2354_s25 = sld [smem:[#allocation3 + $0x79]] }
  0xc9   : > { %v544_v52 = vadd.f32 %v543_v26, %v540_v45  ;;  %v1074_v2 = vadd.f32 %v1073_v41, %v1070_v46  ;;  %v1089_v26 = vmul.f32 %v1088_v12, %v2156_v32  ;;  %v590_v37 = vstv %s2301_s13  ;;  %s2372_s21 = sld [smem:[#allocation3 + $0x37]] }
  0xca   : > { %v931_v32 = vadd.f32 %v930_v17, %v927_v19  ;;  %v934_v11 = vmul.f32 %v2236_v31, %v933_v25  ;;  %v1101_v41 = vmul.f32 %v1954_v7, %v1100_v29  ;;  %v587_v47 = vmul.f32 %v1986_v28, %v586_v30  ;;  %s2378_s13 = sld [smem:[#allocation3 + $0x5d]] }
  0xcb   : > { %v690_v60 = vpop.permute.xlu1 %689  ;;  %v552_v1 = vadd.f32 %v2204_v9, %v544_v52  ;;  %v1104_v52 = vstv %s2316_s23  ;;  %v945_v28 = vstv %s2322_s2  ;;  %v730_v12 = vstv %s2340_s0  ;;  %s2395_s23 = sld [smem:[#allocation3 + $0x7e]] }
  0xcc   : > { %v692_v4 = vadd.f32 %v690_v60, %v684_v54  ;;  %v1080_v5 = vpop.permute.xlu0 %1079  ;;  %v941_v38 = vpop.permute.xlu2 %940  ;;  %v935_v58 = vadd.f32 %v934_v11, %v931_v32  ;;  %v726_v60 = vstv %s2327_s4  ;;  %v949_v0 = vstv %s2331_s19  ;;  %s2401_s2 = sld [smem:[#allocation3 + $0x3a]] }
  0xcd   : > { %v556_v13 = vadd.f32 %v555_v50, %v552_v1  ;;  %v1082_v9 = vadd.f32 %v1080_v5, %v1074_v2  ;;  %v602_v50 = vstv %s2311_s22  ;;  %v1105_v1 = vmul.f32 %v2177_v48, %v1104_v52  ;;  %s2391_s22 = sld [smem:[#allocation3 + $0x5e]] }
  0xce   : > { %v696_v16 = vadd.f32 %v695_v53, %v692_v4  ;;  %v603_v3 = vmul.f32 %v2050_v35, %v602_v50  ;;  %v1116_v4 = vstv %s2335_s18  ;;  %v727_v5 = vmul.f32 %v1965_v15, %v726_v60  ;;  %s2406_s4 = sld [smem:[#allocation3 + $0x7f]] }
  0xcf   : > { %v560_v22 = vadd.f32 %v559_v57, %v556_v13  ;;  %v1086_v23 = vadd.f32 %v1085_v61, %v1082_v9  ;;  %v715_v57 = vmul.f32 %v2207_v14, %v714_v40  ;;  %v946_v13 = vmul.f32 %v1974_v20, %v945_v28  ;;  %v2375_v9 = vld [vmem:[%s2116_s14 + $0x18] sm:$0xff]  ;;  %s2389_s14 = sld [smem:[#allocation3 + $0x39]] }
  0xd0   : > { %v700_v36 = vadd.f32 %v699_v8, %v696_v16  ;;  %v606_v48 = vstv %s2345_s1  ;;  %v1117_v21 = vmul.f32 %v1951_v6, %v1116_v4  ;;  %v731_v25 = vmul.f32 %v2236_v31, %v730_v12  ;;  %s2410_s19 = sld [smem:[#allocation3 + $0x60]] }
  0xd1   : > { %v568_v24 = vadd.f32 %v2191_v62, %v560_v22  ;;  %v2348_v62 = vld [vmem:[%s2069_s26 + $0x30] sm:$0xff]  ;;  %v1090_v46 = vadd.f32 %v1089_v26, %v1086_v23  ;;  %v1120_v26 = vstv %s2354_s25  ;;  %v607_v30 = vmul.f32 %v2375_v9, %v606_v48  ;;  %s2415_s18 = sld [smem:[#allocation3 + $0x3c]] }
  0xd2   : > { %v591_v10 = vmul.f32 %v2348_v62, %v590_v37  ;;  %v742_v6 = vstv %s2359_s27  ;;  %v1121_v11 = vmul.f32 %v2207_v14, %v1120_v26  ;;  %v1136_v52 = vstv %s2383_s20  ;;  %s2418_s0 = sld [smem:[#allocation3 + $0x81]]  ;;  %v1671_v26 = vld [vmem:[%s1932_s24 + $0x21] sm:$0xff] }
  0xd3   : > { %v706_v39 = vpop.permute.xlu1 %705  ;;  %v572_v42 = vadd.f32 %v571_v63, %v568_v24  ;;  %s2422_s1 = sld [smem:[#allocation3 + $0x61]] }
  0xd4   : > { %v708_v45 = vadd.f32 %v706_v39, %v700_v36  ;;  %v1096_v51 = vpop.permute.xlu0 %1095  ;;  %v957_v22 = vpop.permute.xlu2 %956  ;;  %v950_v36 = vmul.f32 %v2263_v44, %v949_v0  ;;  %s2426_s25 = sld [smem:[#allocation3 + $0x3d]] }
  0xd5   : > { %v576_v53 = vadd.f32 %v575_v27, %v572_v42  ;;  %v1098_v56 = vadd.f32 %v1096_v51, %v1090_v46  ;;  %v746_v46 = vstv %s2372_s21  ;;  %v758_v60 = vstv %s2389_s14  ;;  %s2429_s27 = sld [smem:[#allocation3 + $0x82]] }
  0xd6   : > { %v712_v54 = vadd.f32 %v711_v34, %v708_v45  ;;  %s2438_s21 = sld [smem:[#allocation3 + $0x3f]] }
  0xd7   : > { %v584_v7 = vadd.f32 %v2099_v55, %v576_v53  ;;  %v1102_v61 = vadd.f32 %v1101_v41, %v1098_v56  ;;  %v943_v55 = vadd.f32 %v941_v38, %v935_v58  ;;  %v743_v38 = vmul.f32 %v1974_v20, %v742_v6  ;;  %s2447_s20 = sld [smem:[#allocation3 + $0x85]] }
  0xd8   : > { %v716_v8 = vadd.f32 %v715_v57, %v712_v54  ;;  %v961_v41 = vstv %s2378_s13  ;;  %v747_v56 = vmul.f32 %v2263_v44, %v746_v46  ;;  %s2442_s13 = sld [smem:[#allocation3 + $0x63]] }
  0xd9   : > { %v588_v2 = vadd.f32 %v587_v47, %v584_v7  ;;  %v1106_v19 = vadd.f32 %v1105_v1, %v1102_v61  ;;  %v947_v34 = vadd.f32 %v946_v13, %v943_v55  ;;  %v962_v57 = vmul.f32 %v1970_v18, %v961_v41  ;;  %s2449_s14 = sld [smem:[#allocation3 + $0x40]] }
  0xda   : > { %v965_v7 = vstv %s2391_s22  ;;  %v1148_v61 = vstv %s2395_s23  ;;  %v759_v1 = vmul.f32 %v1970_v18, %v758_v60  ;;  %v1152_v18 = vstv %s2406_s4  ;;  %s2453_s22 = sld [smem:[#allocation3 + $0x64]] }
  0xdb   : > { %v722_v16 = vpop.permute.xlu1 %721  ;;  %v592_v63 = vadd.f32 %v591_v10, %v588_v2  ;;  %v951_v42 = vadd.f32 %v950_v36, %v947_v34  ;;  %v966_v2 = vmul.f32 %v2292_v43, %v965_v7  ;;  %v1149_v13 = vmul.f32 %v1974_v20, %v1148_v61  ;;  %s2460_s23 = sld [smem:[#allocation3 + $0x66]] }
  0xdc   : > { %v724_v17 = vadd.f32 %v722_v16, %v716_v8  ;;  %v1112_v23 = vpop.permute.xlu0 %1111  ;;  %v973_v58 = vpop.permute.xlu2 %972  ;;  %v762_v8 = vstv %s2401_s2  ;;  %s2463_s2 = sld [smem:[#allocation3 + $0x42]] }
  0xdd   : > { %v600_v27 = vadd.f32 %v2240_v49, %v592_v63  ;;  %v1114_v24 = vadd.f32 %v1112_v23, %v1106_v19  ;;  %v1132_v49 = vstv %s2366_s11  ;;  %v959_v10 = vadd.f32 %v957_v22, %v951_v42  ;;  %s2436_s11 = sld [smem:[#allocation3 + $0x84]] }
  0xde   : > { %v728_v29 = vadd.f32 %v727_v5, %v724_v17  ;;  %v1133_v14 = vmul.f32 %v1965_v15, %v1132_v49  ;;  %v1137_v15 = vmul.f32 %v2236_v31, %v1136_v52  ;;  %v763_v48 = vmul.f32 %v2292_v43, %v762_v8  ;;  %s2467_s4 = sld [smem:[#allocation3 + $0x88]] }
  0xdf   : > { %v604_v37 = vadd.f32 %v603_v3, %v600_v27  ;;  %v1118_v32 = vadd.f32 %v1117_v21, %v1114_v24  ;;  %v963_v4 = vadd.f32 %v962_v57, %v959_v10  ;;  %v977_v17 = vstv %s2410_s19  ;;  %s2470_s19 = sld [smem:[#allocation3 + $0x43]] }
  0xe0   : > { %v732_v39 = vadd.f32 %v731_v25, %v728_v29  ;;  %v774_v21 = vstv %s2415_s18  ;;  %v1153_v22 = vmul.f32 %v2263_v44, %v1152_v18  ;;  %v1164_v23 = vstv %s2418_s0  ;;  %v1672_v44 = vld [vmem:[%s1945_s28 + $0x10] sm:$0xff]  ;;  %s2457_s28 = sld [smem:[#allocation3 + $0x87]] }
  0xe1   : > { %v2398_v40 = vadd.f32 %v607_v30, %v604_v37  ;;  %v1122_v50 = vadd.f32 %v1121_v11, %v1118_v32  ;;  %v967_v63 = vadd.f32 %v966_v2, %v963_v4  ;;  %v978_v27 = vmul.f32 %v1671_v26, %v977_v17  ;;  %s2472_s18 = sld [smem:[#allocation3 + $0x21]] }
  0xe2   : > { %v981_v24 = vstv %s2422_s1  ;;  %v775_v30 = vmul.f32 %v1671_v26, %v774_v21  ;;  %v1165_v37 = vmul.f32 %v1672_v44, %v1164_v23  ;;  %v778_v32 = vstv %s2426_s25  ;;  %s2480_s0 = sld [smem:[#allocation3 + $0x22]] }
  0xe3   : > { %v738_v45 = vpop.permute.xlu1 %737  ;;  %v975_v29 = vadd.f32 %v973_v58, %v967_v63  ;;  %v1168_v49 = vstv %s2429_s27  ;;  %v982_v42 = vmul.f32 %v2319_v33, %v981_v24  ;;  %v779_v46 = vmul.f32 %v2319_v33, %v778_v32  ;;  %v1673_v58 = vld [vmem:[%s1932_s24 + $0x30] sm:$0xff]  ;;  %s2476_s24 = sld [smem:[#allocation3 + $0x8a]] }
  0xe4   : > { %v740_v47 = vadd.f32 %v738_v45, %v732_v39  ;;  %v1128_v51 = vpop.permute.xlu0 %1127  ;;  %v989_v20 = vpop.permute.xlu2 %988  ;;  %v794_v61 = vstv %s2449_s14  ;;  %v997_v4 = vstv %s2453_s22  ;;  %s2482_s1 = sld [smem:[#allocation3 + $0x67]]  ;;  %v1009_v21 = vstv %s2460_s23 }
  0xe5   : > { %v1130_v54 = vadd.f32 %v1128_v51, %v1122_v50  ;;  %v979_v39 = vadd.f32 %v978_v27, %v975_v29  ;;  %v1180_v50 = vstv %s2436_s11  ;;  %s2487_s25 = sld [smem:[#allocation3 + $0x8b]]  ;;  %v810_v29 = vstv %s2470_s19 }
  0xe6   : > { %v744_v53 = vadd.f32 %v743_v38, %v740_v47  ;;  %v1169_v47 = vmul.f32 %v2292_v43, %v1168_v49  ;;  %v1181_v10 = vmul.f32 %v1671_v26, %v1180_v50  ;;  %s2490_s27 = sld [smem:[#allocation3 + $0x45]] }
  0xe7   : > { %v1134_v28 = vadd.f32 %v1133_v14, %v1130_v54  ;;  %v790_v14 = vstv %s2438_s21  ;;  %v983_v51 = vadd.f32 %v982_v42, %v979_v39  ;;  %s2493_s11 = sld [smem:[#allocation6]]  ;;  %v618_v26 = vstv %s2472_s18 }
  0xe8   : > { %v748_v3 = vadd.f32 %v747_v56, %v744_v53  ;;  %v993_v56 = vstv %s2442_s13  ;;  %v791_v43 = vmul.f32 %v1673_v58, %v790_v14  ;;  %s2496_s21 = sld [smem:[#allocation8]] }
  0xe9   : > { %v1138_v31 = vadd.f32 %v1137_v15, %v1134_v28  ;;  %v1184_v28 = vstv %s2447_s20  ;;  %s2500_s13 = sld [smem:[#allocation3 + $0x8d]] }
  0xea   : > { %s2504_s20 = sld [smem:[#allocation3 + $0x69]]  ;;  %v1013_v44 = vstv %s2482_s1 }
  0xeb   : > { %v754_v5 = vpop.permute.xlu1 %753  ;;  %s2508_s14 = sld [smem:[#allocation3 + $0x8e]] }
  0xec   : > { %v756_v12 = vadd.f32 %v754_v5, %v748_v3  ;;  %v1144_v55 = vpop.permute.xlu0 %1143  ;;  %v1005_v52 = vpop.permute.xlu2 %1004  ;;  %v991_v3 = vadd.f32 %v989_v20, %v983_v51  ;;  %v1185_v5 = vmul.f32 %v2319_v33, %v1184_v28  ;;  %v806_v33 = vstv %s2463_s2  ;;  %s2513_s22 = sld [smem:[#allocation3 + $0x46]]  ;;  %s381_s2 = sand.u32 1, %s1781_s30  }
  0xed   : > { %v1146_v16 = vadd.f32 %v1144_v55, %v1138_v31  ;;  %v1196_v31 = vstv %s2457_s28  ;;  %v998_v55 = vmul.f32 %v2348_v62, %v997_v4  ;;  %v807_v23 = vmul.f32 %v2050_v35, %v806_v33  ;;  %s2518_s28 = sld [smem:[#allocation3 + $0x6a]] }
  0xee   : > { %v760_v0 = vadd.f32 %v759_v1, %v756_v12  ;;  %v994_v1 = vmul.f32 %v1673_v58, %v993_v56  ;;  %v795_v12 = vmul.f32 %v2348_v62, %v794_v61  ;;  %s2522_s23 = sld [smem:[#allocation2]]  ;;  %v822_v50 = vstv %s2490_s27  ;;  %s1597_s27 = sshll.u32 %s1866_s3, 5 }
  0xef   : > { %v1150_v19 = vadd.f32 %v1149_v13, %v1146_v16  ;;  %s2542_s19 = sld [smem:[#allocation6 + $0x2]] }
  0xf0   : > { %v764_v25 = vadd.f32 %v763_v48, %v760_v0  ;;  %v995_v13 = vadd.f32 %v994_v1, %v991_v3  ;;  %v1197_v48 = vmul.f32 %v1673_v58, %v1196_v31  ;;  %v634_v58 = vstv %s2493_s11  ;;  %s2545_s18 = sld [smem:[#allocation8 + $0x2]] }
  0xf1   : > { %v1154_v6 = vadd.f32 %v1153_v22, %v1150_v19  ;;  %v1200_v19 = vstv %s2467_s4  ;;  %s2536_s4 = sld [smem:[#allocation8 + $0x3]]  ;;  %v637_v1 = vstv %s2496_s21 }
  0xf2   : > { %v999_v20 = vadd.f32 %v998_v55, %v995_v13  ;;  %v1201_v24 = vmul.f32 %v2348_v62, %v1200_v19  ;;  %v1435_v62 = vld [vmem:[%s2069_s26 + $0x31] sm:$0xff]  ;;  %s2532_s26 = sld [smem:[#allocation6 + $0x3]] }
  0xf3   : > { %v770_v34 = vpop.permute.xlu1 %769  ;;  %s2552_s1 = sld [smem:[#allocation8 + $0x1]] }
  0xf4   : > { %v772_v36 = vadd.f32 %v770_v34, %v764_v25  ;;  %v1160_v11 = vpop.permute.xlu0 %1159  ;;  %v2485_v0 = vpop.permute.xlu2 %817  ;;  %v622_v34 = vstv %s2480_s0  ;;  %v640_v13 = vstv %s2522_s23  ;;  %s2550_s0 = sld [smem:[#allocation6 + $0x1]] }
  0xf5   : > { %v1162_v38 = vadd.f32 %v1160_v11, %v1154_v6  ;;  %v619_v6 = vmul.f32 %v2106_v59, %v618_v26  ;;  %v811_v11 = vmul.f32 %v2375_v9, %v810_v29 }
  0xf6   : > { %v776_v45 = vadd.f32 %v775_v30, %v772_v36  ;;  %v1212_v30 = vstv %s2476_s24  ;;  %v1010_v36 = vmul.f32 %v2050_v35, %v1009_v21  ;;  %s1409_s24 = sshll.u32 %s381_s2, 5 }
  0xf7   : > { %v1166_v41 = vadd.f32 %v1165_v37, %v1162_v38  ;;  %v1007_v37 = vadd.f32 %v1005_v52, %v999_v20  ;;  %v1216_v38 = vstv %s2487_s25  ;;  %s2555_s25 = scalar_lea.vmem [#allocation9], %s1409_s24  ;;  %v1247_v26 = vstv %s2536_s4  ;;  %s1739_s4 = scalar_lea.hbm %s2612_s8, 64 }
  0xf8   : > { %v780_v54 = vadd.f32 %v779_v46, %v776_v45  ;;  %v1213_v45 = vmul.f32 %v2050_v35, %v1212_v30  ;;  %v623_v46 = vmul.f32 %v1435_v62, %v622_v34  ;;  %v1217_v52 = vmul.f32 %v2375_v9, %v1216_v38  ;;  %s1267_s3 = sshll.u32 %s2555_s25, 4  ;;  %s1268_s3 = int_to_ptr.vmem [resolvable:$true] %s1267_s3 }
  0xf9   : > { %v1170_v57 = vadd.f32 %v1169_v47, %v1166_v41  ;;  %v1014_v35 = vmul.f32 %v2375_v9, %v1013_v44  ;;  %v826_v9 = vstv %s2513_s22 }
  0xfb   : > { %v786_v53 = vpop.permute.xlu1 %785 }
  0xfc   : > { %v788_v60 = vadd.f32 %v786_v53, %v780_v54  ;;  %v1176_v7 = vpop.permute.xlu0 %1175  ;;  %v630_v47 = vpop.permute.xlu2 %629  ;;  %v1011_v53 = vadd.f32 %v1010_v36, %v1007_v37  ;;  %v1228_v54 = vstv %s2500_s13  ;;  %v1044_v36 = vstv %s2545_s18  ;;  %s1266_s13 = scalar_lea.hbm %s2612_s8, %s1597_s27 }
  0xfd   : > { %v1178_v15 = vadd.f32 %v1176_v7, %v1170_v57  ;;  %v1229_v28 = vmul.f32 %v2106_v59, %v1228_v54 }
  0xfe   : > { %v792_v8 = vadd.f32 %v791_v43, %v788_v60  ;;  %v1025_v43 = vstv %s2504_s20  ;;  %v1232_v60 = vstv %s2508_s14  ;;  %v1015_v4 = vadd.f32 %v1014_v35, %v1011_v53  ;;  %s1269_s20 = sshll.u32 %s1266_s13, 4  ;;  %s1255_s14 = scalar_lea.sflag [#allocation4], %s381_s2  ;;  %s1270_s20 = int_to_ptr.hbm [resolvable:$true] %s1269_s20 }
  0xff   : > { %v1182_v2 = vadd.f32 %v1181_v10, %v1178_v15  ;;  %v823_v10 = vmul.f32 %v2106_v59, %v822_v50  ;;  %v1233_v31 = vmul.f32 %v1435_v62, %v1232_v60  ;;  %s1733_s22 = sshra.s32 %s1270_s20, 4  ;;  %s1734_s22 = int_to_ptr.hbm [resolvable:$true] %s1733_s22 }
 0x100   : > { %v796_v63 = vadd.f32 %v795_v12, %v792_v8  ;;  %v1026_v12 = vmul.f32 %v2106_v59, %v1025_v43  ;;  %v827_v59 = vmul.f32 %v1435_v62, %v826_v9  ;;  %p1740_p3 = scmp.lt.s32.totalorder %s1734_s22, %s2612_s8 }
 0x101   : > { %v1186_v16 = vadd.f32 %v1185_v5, %v1182_v2  ;;  %v1029_v2 = vstv %s2518_s28  ;;  %s1735_s28 = scalar_lea.hbm %s1734_s22, 32 }
 0x102   : > { %p1736_p0 = scmp.ne.s32.totalorder %s1734_s22, %s1735_s28  ;;  %p1741_p4 = scmp.lt.s32.totalorder %s1739_s4, %s1735_s28 }
 0x103   : > { %v802_v18 = vpop.permute.xlu1 %801 }
 0x104   : > { %v1192_v17 = vpop.permute.xlu0 %1191  ;;  %v804_v25 = vadd.f32 %v802_v18, %v796_v63  ;;  %v1240_v63 = vpop.permute.xlu2 %1239  ;;  %p1737_p1 = pnand %p1736_p0, %p1883_p5  ;;  %p1742_p7 = por %p1741_p4, %p1740_p3 }
 0x105   : > { %v1194_v22 = vadd.f32 %v1192_v17, %v1186_v16  ;;  %v1030_v16 = vmul.f32 %v1435_v62, %v1029_v2 }
 0x106   : > { %v808_v32 = vadd.f32 %v807_v23, %v804_v25  ;;  %p1738_p2 = pneg %p1737_p1 }
 0x107   : > { %v1198_v27 = vadd.f32 %v1197_v48, %v1194_v22  ;;  %v1244_v22 = vstv %s2532_s26 }
 0x108   : > { %p1743_p8 = pnand %p1742_p7, %p1738_p2 }
 0x109   : > { %v1202_v42 = vadd.f32 %v1201_v24, %v1198_v27  ;;  %v1041_v27 = vstv %s2542_s19 }
 0x10b   : > { %v614_v49 = vpop.permute.xlu1 %613 }
 0x10c   : > { %v616_v39 = vadd.f32 %v614_v49, %v2398_v40  ;;  %v1208_v41 = vpop.permute.xlu0 %1207  ;;  %v812_v40 = vadd.f32 %v811_v11, %v808_v32  ;;  %v841_v49 = vstv %s2552_s1 }
 0x10d   : > { %v1210_v51 = vadd.f32 %v1208_v41, %v1202_v42 }
 0x10e   : > { %v620_v14 = vadd.f32 %v619_v6, %v616_v39  ;;  %v820_v61 = vadd.f32 %v2485_v0, %v812_v40  ;;  %v838_v6 = vstv %s2550_s0 }
 0x10f   : > { %v1214_v56 = vadd.f32 %v1213_v45, %v1210_v51 }
 0x110   : > { %v624_v57 = vadd.f32 %v623_v46, %v620_v14  ;;  %v824_v48 = vadd.f32 %v823_v10, %v820_v61 }
 0x111   : > { %v1218_v15 = vadd.f32 %v1217_v52, %v1214_v56 }
 0x112   : > { %v632_v7 = vadd.f32 %v630_v47, %v624_v57  ;;  %v828_v34 = vadd.f32 %v827_v59, %v824_v48 }
 0x113   : > { %v1224_v3 = vpop.permute.xlu1 %1223 }
 0x114   : > { %v635_v5 = vmul.f32 %v634_v58, %v632_v7  ;;  %v1226_v8 = vadd.f32 %v1224_v3, %v1218_v15  ;;  %v1021_v55 = vpop.permute.xlu0 %1020 }
 0x115   : > { %v1023_v33 = vadd.f32 %v1021_v55, %v1015_v4 }
 0x116   : > { %v638_v18 = vadd.f32 %v637_v1, %v635_v5  ;;  %v1230_v0 = vadd.f32 %v1229_v28, %v1226_v8 }
 0x117   : > { %v1027_v19 = vadd.f32 %v1026_v12, %v1023_v33 }
 0x118   : > { %vm639_vm1 = vcmp.ge.f32.partialorder %v638_v18, 0.0  ;;  %v641_v17 = vmul.f32 %v640_v13, %v638_v18  ;;  %v1234_v21 = vadd.f32 %v1233_v31, %v1230_v0 }
 0x119   : > { %v1031_v25 = vadd.f32 %v1030_v16, %v1027_v19 }
 0x11a   : > { %v642_v20 = vsel %vm639_vm1, %v638_v18, %v641_v17  ;;  %v1242_v23 = vadd.f32 %v1240_v63, %v1234_v21 }
 0x11b   : > { %644 = vst.msk [vmem:[%s2555_s25] sm:$0xff] %vm643_vm0, %v642_v20  ;;  %v1037_v29 = vpop.permute.xlu1 %1036 }
 0x11c   : > { %v1245_v24 = vmul.f32 %v1244_v22, %v1242_v23  ;;  %v1039_v30 = vadd.f32 %v1037_v29, %v1031_v25  ;;  %v834_v44 = vpop.permute.xlu0 %833 }
 0x11d   : > { %v836_v11 = vadd.f32 %v834_v44, %v828_v34 }
 0x11e   : > { %v1248_v37 = vadd.f32 %v1247_v26, %v1245_v24  ;;  %v1042_v32 = vmul.f32 %v1041_v27, %v1039_v30 }
 0x11f   : > { %v839_v39 = vmul.f32 %v838_v6, %v836_v11 }
 0x120   : > { %vm1249_vm2 = vcmp.ge.f32.partialorder %v1248_v37, 0.0  ;;  %v1250_v62 = vmul.f32 %v1248_v37, %v640_v13  ;;  %v1045_v38 = vadd.f32 %v1044_v36, %v1042_v32 }
 0x121   : > { %v842_v46 = vadd.f32 %v841_v49, %v839_v39 }
 0x122   : > { %v1251_v42 = vsel %vm1249_vm2, %v1248_v37, %v1250_v62  ;;  %vm1046_vm3 = vcmp.ge.f32.partialorder %v1045_v38, 0.0  ;;  %v1047_v45 = vmul.f32 %v1045_v38, %v640_v13 }
 0x123   : > { %1587 = vst.msk [vmem:[%s2555_s25 + $0x18] sm:$0xff] %vm643_vm0, %v1251_v42  ;;  %vm843_vm4 = vcmp.ge.f32.partialorder %v842_v46, 0.0  ;;  %v844_v47 = vmul.f32 %v842_v46, %v640_v13 }
 0x124   : > { %v1048_v41 = vsel %vm1046_vm3, %v1045_v38, %v1047_v45 }
 0x125   : > { %1548 = vst.msk [vmem:[%s2555_s25 + $0x10] sm:$0xff] %vm643_vm0, %v1048_v41  ;;  %v845_v50 = vsel %vm843_vm4, %v842_v46, %v844_v47 }
 0x126   : > { %1509 = vst.msk [vmem:[%s2555_s25 + $0x8] sm:$0xff] %vm643_vm0, %v845_v50 }
 0x127   : > { %1746 = shalt.err (!%p1743_p8)
}
 0x128   : > { %s1795_s2 = smov 128   ;;  %s1796_s24 = smov 8  }
 0x129   : > { %1610 = dma.vmem_to_hbm [thread:$0]  (%p1883_p5), %s1268_s3, 512, %s1270_s20, %s1255_s14, %s1795_s2, %s1795_s2, %s1796_s24  }
 0x12a PF: > { %p1632_p9 = scmp.ge.s32.totalorder %s1789_s10, 2  ;;  %s1284_s0 = sand.u32 1, %s1777_s29  }
 0x12b   : > { %s1285_s1 = scalar_lea.sflag [#allocation4], %s1284_s0 }
 0x12c   : > { %p1623_p10 = pnand %p1632_p9, %p1887_p6 }
 0x12e   : > { %p1624_p11 = pneg %p1623_p10 }
 0x130   : > { %1772 = dma.done.wait (%p1624_p11), %s1285_s1, 512  }
 0x131   : > { %1774 = vsyncadd (%p1624_p11), %s1285_s1, 4294966784  ;;  %p21_p12 = scmp.ge.s32.totalorder %s1870_s12, 4   ;;  %s2628_s29 = smov %s1781_s30 }
 0x132   : > { %s2629_s30 = smov %s1785_s9  ;;  %s2630_s9 = smov %s1881_s15 }
 0x133   : > { %s2631_s10 = smov %s1870_s12  ;;  %23 = sbr.rel (!%p21_p12) target bundleno = 11 (0xb), region = 124 }
 0x138   :  { %1291 = vsyncpa [#allocation4], 1 }
 0x139   :  { %1293 = vsyncpa [#allocation4 + $0x1], 1 }
 0x13a   :  { %1294 = vsyncpa [#allocation5], 1 }
 0x13b   :  { %1296 = vsyncpa [#allocation5 + $0x1], 1 }
 0x13c   :  { %1297 = vsyncpa [#allocation7], 1 }

</bundles_post_ra>
